<compile_context>
chip_gen: v7x
topology: tpu7x:2x2x1
jax: 0.10.0
libtpu: 0.0.40
codegen_flags: <defaults>
</compile_context>

<pallas_src>
from functools import partial

import numpy as np
import jax
import jax.numpy as jnp
from jax.experimental import pallas as pl
from jax.experimental.pallas import tpu as pltpu  # noqa: F401  (not needed for this grid-less kernel)


# ------------------------------ fused kernel ---------------------------------

def _fused_kernel(x_ref, w1_ref, w2_ref, scp_ref, selr_ref, f1w_ref, fcw_ref,
                  bias_ref, out_ref):
    f32 = jnp.float32
    bf16 = jnp.bfloat16

    # ---- conv1 (1->6, 5x5 valid): 5 banded matmuls, kw folded into weights ----
    # acc1[h, w*6+co] = sum_{kh,kw} x[h+kh, w+kw] * w1[co,0,kh,kw]
    acc1 = jnp.zeros((24, 144), f32)
    for kh in range(5):
        xt = x_ref[pl.ds(kh, 24), :].astype(bf16)                 # (24, 28) lane-aligned
        acc1 = acc1 + jnp.dot(xt, w1_ref[kh], preferred_element_type=f32)
    y1 = (acc1 + bias_ref[0:1, :]).astype(bf16)                   # (24, 144)  [h, w*6+c]

    # ---- maxpool 2x2 + relu via 0/1 selection matmuls (exact in bf16) --------
    ph = jnp.maximum(jnp.dot(selr_ref[0], y1, preferred_element_type=f32),
                     jnp.dot(selr_ref[1], y1, preferred_element_type=f32)).astype(bf16)
    p1 = jnp.maximum(jnp.dot(ph, scp_ref[0], preferred_element_type=f32),
                     jnp.dot(ph, scp_ref[1], preferred_element_type=f32))    # (12, 72)
    p1 = jnp.maximum(p1, 0.0).astype(bf16)                        # kept in registers

    # ---- conv2 (6->16, 5x5 valid): 5 banded matmuls on sublane slices of p1 --
    acc2 = jnp.zeros((8, 128), f32)
    for kh in range(5):
        acc2 = acc2 + jnp.dot(p1[kh:kh + 8, :], w2_ref[kh],
                              preferred_element_type=f32)          # (8, 128)
    y2 = (acc2 + bias_ref[1:2, :][:, :128]).astype(bf16)          # [h, w*16+c]

    # ---- maxpool 2x2 + relu ---------------------------------------------------
    sr2a = selr_ref[2][:4, :8]
    sr2b = selr_ref[3][:4, :8]
    ph2 = jnp.maximum(jnp.dot(sr2a, y2, preferred_element_type=f32),
                      jnp.dot(sr2b, y2, preferred_element_type=f32)).astype(bf16)
    sc2a = scp_ref[2][:128, :64]
    sc2b = scp_ref[3][:128, :64]
    p2 = jnp.maximum(jnp.dot(ph2, sc2a, preferred_element_type=f32),
                     jnp.dot(ph2, sc2b, preferred_element_type=f32))          # (4, 64)
    p2 = jnp.maximum(p2, 0.0).astype(bf16)

    # ---- fc1 (256->120, padded to 128 lanes); flatten folded into 4 matmuls --
    h1 = bias_ref[2:3, :][:, :128]                                # (1, 128) f32
    for h in range(4):
        h1 = h1 + jnp.dot(p2[h:h + 1, :], f1w_ref[h], preferred_element_type=f32)
    h1 = jnp.maximum(h1, 0.0).astype(bf16)

    # ---- fc2 (120->84, padded) + relu ----------------------------------------
    h2 = jnp.maximum(jnp.dot(h1, fcw_ref[0], preferred_element_type=f32)
                     + bias_ref[3:4, :][:, :128], 0.0).astype(bf16)

    # ---- fc3 (84->N, padded) + sigmoid (exp on EUP) ---------------------------
    logits = (jnp.dot(h2, fcw_ref[1], preferred_element_type=f32)
              + bias_ref[4:5, :][:, :128])
    out_ref[...] = 1.0 / (1.0 + jnp.exp(-logits))                 # (1, 128)


# -------------------- one-time host-side weight packing -----------------------

def prepare_params(params):
    """Pack PyTorch-layout weights into MXU-friendly slabs. Run ONCE, not per call."""
    f32 = np.float32
    w1 = np.asarray(params["w1"], f32)       # (6, 1, 5, 5)
    b1 = np.asarray(params["b1"], f32)       # (6,)
    w2 = np.asarray(params["w2"], f32)       # (16, 6, 5, 5)
    b2 = np.asarray(params["b2"], f32)       # (16,)
    fc1_w = np.asarray(params["fc1_w"], f32) # (120, 256)
    fc1_b = np.asarray(params["fc1_b"], f32)
    fc2_w = np.asarray(params["fc2_w"], f32) # (84, 120)
    fc2_b = np.asarray(params["fc2_b"], f32)
    fc3_w = np.asarray(params["fc3_w"], f32) # (N, 84)
    fc3_b = np.asarray(params["fc3_b"], f32)
    n_out = fc3_w.shape[0]
    assert fc1_w.shape[1] == 16 * 4 * 4, "flatten layout hard-coded to (16,4,4)"
    assert n_out <= 128, "classifier head must fit in one 128-lane tile"

    # conv1 banded per-kh slab: W[kh][w+kw, w*6+co] = w1[co,0,kh,kw]
    w1big = np.zeros((5, 28, 24, 6), f32)
    for kh in range(5):
        for kw in range(5):
            for w in range(24):
                w1big[kh, w + kw, w, :] = w1[:, 0, kh, kw]
    w1big = w1big.reshape(5, 28, 144)

    # conv2 banded per-kh slab: W[kh][(w+kw)*6+c, w*16+co] = w2[co,c,kh,kw]
    w2big = np.zeros((5, 72, 128), f32)
    for kh in range(5):
        for kw in range(5):
            tap = w2[:, :, kh, kw].T           # (6 c, 16 co)
            for w in range(8):
                w2big[kh, (w + kw) * 6:(w + kw) * 6 + 6, w * 16:(w + 1) * 16] = tap

    # 0/1 pooling selectors (exact in bf16)
    eye24 = np.eye(24, dtype=f32)
    eye8 = np.eye(8, dtype=f32)
    selr = np.zeros((4, 12, 24), f32)          # row-pool (stride-2 row select)
    selr[0] = eye24[0::2, :]
    selr[1] = eye24[1::2, :]
    selr[2, :4, :8] = eye8[0::2, :]
    selr[3, :4, :8] = eye8[1::2, :]
    scp = np.zeros((4, 144, 72), f32)          # col-pool (stride-2 col select, per-channel)
    scp[0] = np.kron(eye24[0::2, :].T, np.eye(6, dtype=f32))
    scp[1] = np.kron(eye24[1::2, :].T, np.eye(6, dtype=f32))
    scp[2, :128, :64] = np.kron(eye8[0::2, :].T, np.eye(16, dtype=f32))
    scp[3, :128, :64] = np.kron(eye8[1::2, :].T, np.eye(16, dtype=f32))

    # fc1: permute columns from torch (c*16 + h*4 + w) to [h][w*16+c], pad 120->128
    fc1_blk = fc1_w.reshape(120, 16, 4, 4).transpose(2, 3, 1, 0).reshape(4, 64, 120)
    fc1_blk = np.pad(fc1_blk, ((0, 0), (0, 0), (0, 8)))

    # fc2/fc3 padded to (128,128); zero pad-rows kill the padded lanes of h1/h2.
    fcw = np.zeros((2, 128, 128), f32)
    fcw[0, :120, :84] = fc2_w.T
    fcw[1, :84, :n_out] = fc3_w.T

    # packed biases (kept f32; added after f32 accumulation)
    biasp = np.zeros((5, 144), f32)
    biasp[0, :] = np.tile(b1, 24)
    biasp[1, :128] = np.tile(b2, 8)
    biasp[2, :120] = fc1_b
    biasp[3, :84] = fc2_b
    biasp[4, :n_out] = fc3_b

    slabs = (
        jnp.asarray(w1big, jnp.bfloat16),
        jnp.asarray(w2big, jnp.bfloat16),
        jnp.asarray(scp, jnp.bfloat16),
        jnp.asarray(selr, jnp.bfloat16),
        jnp.asarray(fc1_blk, jnp.bfloat16),
        jnp.asarray(fcw, jnp.bfloat16),
        jnp.asarray(biasp, jnp.float32),
    )
    return slabs, n_out


# ------------------------------ jitted forward --------------------------------

@partial(jax.jit, static_argnames=("n_out",))
def dangerdist_cnn_forward(slabs, x, *, n_out):
    w1big, w2big, scp, selr, fc1_blk, fcw, biasp = slabs
    x2d = x.reshape(28, 28).astype(jnp.float32)
    out = pl.pallas_call(
        _fused_kernel,
        out_shape=jax.ShapeDtypeStruct((1, 128), jnp.float32),
    )(x2d, w1big, w2big, scp, selr, fc1_blk, fcw, biasp)
    return out[:, :n_out]


# ------------------------------ params & reference ----------------------------

def init_params(key, N=1, size=16 * 4 * 4):
    ks = jax.random.split(key, 10)
    return {
        "w1": jax.random.normal(ks[0], (6, 1, 5, 5), jnp.float32) * 0.1,
        "b1": jax.random.normal(ks[1], (6,), jnp.float32) * 0.1,
        "w2": jax.random.normal(ks[2], (16, 6, 5, 5), jnp.float32) * 0.1,
        "b2": jax.random.normal(ks[3], (16,), jnp.float32) * 0.1,
        "fc1_w": jax.random.normal(ks[4], (120, size), jnp.float32) * 0.05,
        "fc1_b": jax.random.normal(ks[5], (120,), jnp.float32) * 0.05,
        "fc2_w": jax.random.normal(ks[6], (84, 120), jnp.float32) * 0.05,
        "fc2_b": jax.random.normal(ks[7], (84,), jnp.float32) * 0.05,
        "fc3_w": jax.random.normal(ks[8], (N, 84), jnp.float32) * 0.05,
        "fc3_b": jax.random.normal(ks[9], (N,), jnp.float32) * 0.05,
    }


def _pool_relu(y):      # (1, C, H, W) -> relu(maxpool2x2) ; plain-JAX reference only
    m = jnp.maximum(jnp.maximum(y[:, :, 0::2, 0::2], y[:, :, 0::2, 1::2]),
                    jnp.maximum(y[:, :, 1::2, 0::2], y[:, :, 1::2, 1::2]))
    return jnp.maximum(m, 0.0)


def _reference_forward(params, x):
    dn = ("NCHW", "OIHW", "NCHW")
    xb = x.reshape(1, 1, 28, 28).astype(jnp.float32)
    y = jax.lax.conv_general_dilated(xb, params["w1"], (1, 1), "VALID",
                                     dimension_numbers=dn) + params["b1"][None, :, None, None]
    y = _pool_relu(y)
    y = jax.lax.conv_general_dilated(y, params["w2"], (1, 1), "VALID",
                                     dimension_numbers=dn) + params["b2"][None, :, None, None]
    y = _pool_relu(y)
    f = y.reshape(1, -1)
    h1 = jnp.maximum(f @ params["fc1_w"].T + params["fc1_b"][None, :], 0.0)
    h2 = jnp.maximum(h1 @ params["fc2_w"].T + params["fc2_b"][None, :], 0.0)
    logits = h2 @ params["fc3_w"].T + params["fc3_b"][None, :]
    return 1.0 / (1.0 + jnp.exp(-logits))


# ----------------------------------- main --------------------------------------

if __name__ == "__main__":
    key = jax.random.PRNGKey(0)
    k_param, k_x = jax.random.split(key)

    N = 1
    params = init_params(k_param, N=N)

    # One-time weight packing (hoisted out of the per-call path).
    slabs, n_out = prepare_params(params)

    # Input consistent with the module: (1, 28, 28) so the encoder output flattens
    # to 16*4*4 = 256 as required by the classifier.
    x = jax.random.normal(k_x, (1, 28, 28), jnp.float32)

    out = jax.block_until_ready(dangerdist_cnn_forward(slabs, x, n_out=n_out))
    assert out.shape == (1, N)

    ref = jax.block_until_ready(_reference_forward(params, x))
    assert bool(jnp.max(jnp.abs(out - ref)) < 5e-3)

    print("KERNEL_OK")
</pallas_src>

<mosaic_0001>
module attributes {stable_mosaic.version = 11 : i64} {
  func.func @_fused_kernel(%arg0: memref<28x28xf32, #tpu.memory_space<vmem>>, %arg1: memref<5x28x144xbf16, #tpu.memory_space<vmem>>, %arg2: memref<5x72x128xbf16, #tpu.memory_space<vmem>>, %arg3: memref<4x144x72xbf16, #tpu.memory_space<vmem>>, %arg4: memref<4x12x24xbf16, #tpu.memory_space<vmem>>, %arg5: memref<4x64x128xbf16, #tpu.memory_space<vmem>>, %arg6: memref<2x128x128xbf16, #tpu.memory_space<vmem>>, %arg7: memref<5x144xf32, #tpu.memory_space<vmem>>, %arg8: memref<1x128xf32, #tpu.memory_space<vmem>>) attributes {dimension_semantics = [], scalar_prefetch = 0 : i64, scratch_operands = 0 : i64, tpu.core_type = #tpu.core_type<tc>} {
    %cst = arith.constant 0.000000e+00 : f32
    %0 = vector.broadcast %cst : f32 to vector<24x144xf32>
    %c0 = arith.constant 0 : index
    %c0_0 = arith.constant 0 : index
    %1 = vector.load %arg0[%c0, %c0_0] : memref<28x28xf32, #tpu.memory_space<vmem>>, vector<24x28xf32>
    %2 = arith.truncf %1 : vector<24x28xf32> to vector<24x28xbf16>
    %c0_1 = arith.constant 0 : index
    %c0_2 = arith.constant 0 : index
    %c0_3 = arith.constant 0 : index
    %3 = vector.load %arg1[%c0_1, %c0_2, %c0_3] : memref<5x28x144xbf16, #tpu.memory_space<vmem>>, vector<1x28x144xbf16>
    %4 = vector.shape_cast %3 : vector<1x28x144xbf16> to vector<28x144xbf16>
    %cst_4 = arith.constant dense<0.000000e+00> : vector<24x144xf32>
    %5 = tpu.matmul %2, %4, %cst_4 {dimension_numbers = #tpu.dot_dimension_numbers<[1], [0], [0], [1], [0, 0, 1, 1], [], []>} : vector<24x28xbf16>, vector<28x144xbf16>, vector<24x144xf32> -> vector<24x144xf32>
    %6 = arith.addf %0, %5 : vector<24x144xf32>
    %c1 = arith.constant 1 : index
    %c0_5 = arith.constant 0 : index
    %7 = vector.load %arg0[%c1, %c0_5] : memref<28x28xf32, #tpu.memory_space<vmem>>, vector<24x28xf32>
    %8 = arith.truncf %7 : vector<24x28xf32> to vector<24x28xbf16>
    %c1_6 = arith.constant 1 : index
    %c0_7 = arith.constant 0 : index
    %c0_8 = arith.constant 0 : index
    %9 = vector.load %arg1[%c1_6, %c0_7, %c0_8] : memref<5x28x144xbf16, #tpu.memory_space<vmem>>, vector<1x28x144xbf16>
    %10 = vector.shape_cast %9 : vector<1x28x144xbf16> to vector<28x144xbf16>
    %cst_9 = arith.constant dense<0.000000e+00> : vector<24x144xf32>
    %11 = tpu.matmul %8, %10, %cst_9 {dimension_numbers = #tpu.dot_dimension_numbers<[1], [0], [0], [1], [0, 0, 1, 1], [], []>} : vector<24x28xbf16>, vector<28x144xbf16>, vector<24x144xf32> -> vector<24x144xf32>
    %12 = arith.addf %6, %11 : vector<24x144xf32>
    %c2 = arith.constant 2 : index
    %c0_10 = arith.constant 0 : index
    %13 = vector.load %arg0[%c2, %c0_10] : memref<28x28xf32, #tpu.memory_space<vmem>>, vector<24x28xf32>
    %14 = arith.truncf %13 : vector<24x28xf32> to vector<24x28xbf16>
    %c2_11 = arith.constant 2 : index
    %c0_12 = arith.constant 0 : index
    %c0_13 = arith.constant 0 : index
    %15 = vector.load %arg1[%c2_11, %c0_12, %c0_13] : memref<5x28x144xbf16, #tpu.memory_space<vmem>>, vector<1x28x144xbf16>
    %16 = vector.shape_cast %15 : vector<1x28x144xbf16> to vector<28x144xbf16>
    %cst_14 = arith.constant dense<0.000000e+00> : vector<24x144xf32>
    %17 = tpu.matmul %14, %16, %cst_14 {dimension_numbers = #tpu.dot_dimension_numbers<[1], [0], [0], [1], [0, 0, 1, 1], [], []>} : vector<24x28xbf16>, vector<28x144xbf16>, vector<24x144xf32> -> vector<24x144xf32>
    %18 = arith.addf %12, %17 : vector<24x144xf32>
    %c3 = arith.constant 3 : index
    %c0_15 = arith.constant 0 : index
    %19 = vector.load %arg0[%c3, %c0_15] : memref<28x28xf32, #tpu.memory_space<vmem>>, vector<24x28xf32>
    %20 = arith.truncf %19 : vector<24x28xf32> to vector<24x28xbf16>
    %c3_16 = arith.constant 3 : index
    %c0_17 = arith.constant 0 : index
    %c0_18 = arith.constant 0 : index
    %21 = vector.load %arg1[%c3_16, %c0_17, %c0_18] : memref<5x28x144xbf16, #tpu.memory_space<vmem>>, vector<1x28x144xbf16>
    %22 = vector.shape_cast %21 : vector<1x28x144xbf16> to vector<28x144xbf16>
    %cst_19 = arith.constant dense<0.000000e+00> : vector<24x144xf32>
    %23 = tpu.matmul %20, %22, %cst_19 {dimension_numbers = #tpu.dot_dimension_numbers<[1], [0], [0], [1], [0, 0, 1, 1], [], []>} : vector<24x28xbf16>, vector<28x144xbf16>, vector<24x144xf32> -> vector<24x144xf32>
    %24 = arith.addf %18, %23 : vector<24x144xf32>
    %c4 = arith.constant 4 : index
    %c0_20 = arith.constant 0 : index
    %25 = vector.load %arg0[%c4, %c0_20] : memref<28x28xf32, #tpu.memory_space<vmem>>, vector<24x28xf32>
    %26 = arith.truncf %25 : vector<24x28xf32> to vector<24x28xbf16>
    %c4_21 = arith.constant 4 : index
    %c0_22 = arith.constant 0 : index
    %c0_23 = arith.constant 0 : index
    %27 = vector.load %arg1[%c4_21, %c0_22, %c0_23] : memref<5x28x144xbf16, #tpu.memory_space<vmem>>, vector<1x28x144xbf16>
    %28 = vector.shape_cast %27 : vector<1x28x144xbf16> to vector<28x144xbf16>
    %cst_24 = arith.constant dense<0.000000e+00> : vector<24x144xf32>
    %29 = tpu.matmul %26, %28, %cst_24 {dimension_numbers = #tpu.dot_dimension_numbers<[1], [0], [0], [1], [0, 0, 1, 1], [], []>} : vector<24x28xbf16>, vector<28x144xbf16>, vector<24x144xf32> -> vector<24x144xf32>
    %30 = arith.addf %24, %29 : vector<24x144xf32>
    %c0_25 = arith.constant 0 : index
    %c0_26 = arith.constant 0 : index
    %31 = vector.load %arg7[%c0_25, %c0_26] : memref<5x144xf32, #tpu.memory_space<vmem>>, vector<1x144xf32>
    %32 = vector.broadcast %31 : vector<1x144xf32> to vector<24x144xf32>
    %33 = arith.addf %30, %32 : vector<24x144xf32>
    %34 = arith.truncf %33 : vector<24x144xf32> to vector<24x144xbf16>
    %c0_27 = arith.constant 0 : index
    %c0_28 = arith.constant 0 : index
    %c0_29 = arith.constant 0 : index
    %35 = vector.load %arg4[%c0_27, %c0_28, %c0_29] : memref<4x12x24xbf16, #tpu.memory_space<vmem>>, vector<1x12x24xbf16>
    %36 = vector.shape_cast %35 : vector<1x12x24xbf16> to vector<12x24xbf16>
    %cst_30 = arith.constant dense<0.000000e+00> : vector<12x144xf32>
    %37 = tpu.matmul %36, %34, %cst_30 {dimension_numbers = #tpu.dot_dimension_numbers<[1], [0], [0], [1], [0, 0, 1, 1], [], []>} : vector<12x24xbf16>, vector<24x144xbf16>, vector<12x144xf32> -> vector<12x144xf32>
    %c1_31 = arith.constant 1 : index
    %c0_32 = arith.constant 0 : index
    %c0_33 = arith.constant 0 : index
    %38 = vector.load %arg4[%c1_31, %c0_32, %c0_33] : memref<4x12x24xbf16, #tpu.memory_space<vmem>>, vector<1x12x24xbf16>
    %39 = vector.shape_cast %38 : vector<1x12x24xbf16> to vector<12x24xbf16>
    %cst_34 = arith.constant dense<0.000000e+00> : vector<12x144xf32>
    %40 = tpu.matmul %39, %34, %cst_34 {dimension_numbers = #tpu.dot_dimension_numbers<[1], [0], [0], [1], [0, 0, 1, 1], [], []>} : vector<12x24xbf16>, vector<24x144xbf16>, vector<12x144xf32> -> vector<12x144xf32>
    %41 = arith.maximumf %37, %40 : vector<12x144xf32>
    %42 = arith.truncf %41 : vector<12x144xf32> to vector<12x144xbf16>
    %c0_35 = arith.constant 0 : index
    %c0_36 = arith.constant 0 : index
    %c0_37 = arith.constant 0 : index
    %43 = vector.load %arg3[%c0_35, %c0_36, %c0_37] : memref<4x144x72xbf16, #tpu.memory_space<vmem>>, vector<1x144x72xbf16>
    %44 = vector.shape_cast %43 : vector<1x144x72xbf16> to vector<144x72xbf16>
    %cst_38 = arith.constant dense<0.000000e+00> : vector<12x72xf32>
    %45 = tpu.matmul %42, %44, %cst_38 {dimension_numbers = #tpu.dot_dimension_numbers<[1], [0], [0], [1], [0, 0, 1, 1], [], []>} : vector<12x144xbf16>, vector<144x72xbf16>, vector<12x72xf32> -> vector<12x72xf32>
    %c1_39 = arith.constant 1 : index
    %c0_40 = arith.constant 0 : index
    %c0_41 = arith.constant 0 : index
    %46 = vector.load %arg3[%c1_39, %c0_40, %c0_41] : memref<4x144x72xbf16, #tpu.memory_space<vmem>>, vector<1x144x72xbf16>
    %47 = vector.shape_cast %46 : vector<1x144x72xbf16> to vector<144x72xbf16>
    %cst_42 = arith.constant dense<0.000000e+00> : vector<12x72xf32>
    %48 = tpu.matmul %42, %47, %cst_42 {dimension_numbers = #tpu.dot_dimension_numbers<[1], [0], [0], [1], [0, 0, 1, 1], [], []>} : vector<12x144xbf16>, vector<144x72xbf16>, vector<12x72xf32> -> vector<12x72xf32>
    %49 = arith.maximumf %45, %48 : vector<12x72xf32>
    %cst_43 = arith.constant 0.000000e+00 : f32
    %50 = vector.broadcast %cst_43 : f32 to vector<12x72xf32>
    %51 = arith.maximumf %49, %50 : vector<12x72xf32>
    %52 = arith.truncf %51 : vector<12x72xf32> to vector<12x72xbf16>
    %cst_44 = arith.constant 0.000000e+00 : f32
    %53 = vector.broadcast %cst_44 : f32 to vector<8x128xf32>
    %54 = vector.extract_strided_slice %52 {offsets = [0, 0], sizes = [8, 72], strides = [1, 1]} : vector<12x72xbf16> to vector<8x72xbf16>
    %c0_45 = arith.constant 0 : index
    %c0_46 = arith.constant 0 : index
    %c0_47 = arith.constant 0 : index
    %55 = vector.load %arg2[%c0_45, %c0_46, %c0_47] : memref<5x72x128xbf16, #tpu.memory_space<vmem>>, vector<1x72x128xbf16>
    %56 = vector.shape_cast %55 : vector<1x72x128xbf16> to vector<72x128xbf16>
    %cst_48 = arith.constant dense<0.000000e+00> : vector<8x128xf32>
    %57 = tpu.matmul %54, %56, %cst_48 {dimension_numbers = #tpu.dot_dimension_numbers<[1], [0], [0], [1], [0, 0, 1, 1], [], []>} : vector<8x72xbf16>, vector<72x128xbf16>, vector<8x128xf32> -> vector<8x128xf32>
    %58 = arith.addf %53, %57 : vector<8x128xf32>
    %59 = vector.extract_strided_slice %52 {offsets = [1, 0], sizes = [8, 72], strides = [1, 1]} : vector<12x72xbf16> to vector<8x72xbf16>
    %c1_49 = arith.constant 1 : index
    %c0_50 = arith.constant 0 : index
    %c0_51 = arith.constant 0 : index
    %60 = vector.load %arg2[%c1_49, %c0_50, %c0_51] : memref<5x72x128xbf16, #tpu.memory_space<vmem>>, vector<1x72x128xbf16>
    %61 = vector.shape_cast %60 : vector<1x72x128xbf16> to vector<72x128xbf16>
    %cst_52 = arith.constant dense<0.000000e+00> : vector<8x128xf32>
    %62 = tpu.matmul %59, %61, %cst_52 {dimension_numbers = #tpu.dot_dimension_numbers<[1], [0], [0], [1], [0, 0, 1, 1], [], []>} : vector<8x72xbf16>, vector<72x128xbf16>, vector<8x128xf32> -> vector<8x128xf32>
    %63 = arith.addf %58, %62 : vector<8x128xf32>
    %64 = vector.extract_strided_slice %52 {offsets = [2, 0], sizes = [8, 72], strides = [1, 1]} : vector<12x72xbf16> to vector<8x72xbf16>
    %c2_53 = arith.constant 2 : index
    %c0_54 = arith.constant 0 : index
    %c0_55 = arith.constant 0 : index
    %65 = vector.load %arg2[%c2_53, %c0_54, %c0_55] : memref<5x72x128xbf16, #tpu.memory_space<vmem>>, vector<1x72x128xbf16>
    %66 = vector.shape_cast %65 : vector<1x72x128xbf16> to vector<72x128xbf16>
    %cst_56 = arith.constant dense<0.000000e+00> : vector<8x128xf32>
    %67 = tpu.matmul %64, %66, %cst_56 {dimension_numbers = #tpu.dot_dimension_numbers<[1], [0], [0], [1], [0, 0, 1, 1], [], []>} : vector<8x72xbf16>, vector<72x128xbf16>, vector<8x128xf32> -> vector<8x128xf32>
    %68 = arith.addf %63, %67 : vector<8x128xf32>
    %69 = vector.extract_strided_slice %52 {offsets = [3, 0], sizes = [8, 72], strides = [1, 1]} : vector<12x72xbf16> to vector<8x72xbf16>
    %c3_57 = arith.constant 3 : index
    %c0_58 = arith.constant 0 : index
    %c0_59 = arith.constant 0 : index
    %70 = vector.load %arg2[%c3_57, %c0_58, %c0_59] : memref<5x72x128xbf16, #tpu.memory_space<vmem>>, vector<1x72x128xbf16>
    %71 = vector.shape_cast %70 : vector<1x72x128xbf16> to vector<72x128xbf16>
    %cst_60 = arith.constant dense<0.000000e+00> : vector<8x128xf32>
    %72 = tpu.matmul %69, %71, %cst_60 {dimension_numbers = #tpu.dot_dimension_numbers<[1], [0], [0], [1], [0, 0, 1, 1], [], []>} : vector<8x72xbf16>, vector<72x128xbf16>, vector<8x128xf32> -> vector<8x128xf32>
    %73 = arith.addf %68, %72 : vector<8x128xf32>
    %74 = vector.extract_strided_slice %52 {offsets = [4, 0], sizes = [8, 72], strides = [1, 1]} : vector<12x72xbf16> to vector<8x72xbf16>
    %c4_61 = arith.constant 4 : index
    %c0_62 = arith.constant 0 : index
    %c0_63 = arith.constant 0 : index
    %75 = vector.load %arg2[%c4_61, %c0_62, %c0_63] : memref<5x72x128xbf16, #tpu.memory_space<vmem>>, vector<1x72x128xbf16>
    %76 = vector.shape_cast %75 : vector<1x72x128xbf16> to vector<72x128xbf16>
    %cst_64 = arith.constant dense<0.000000e+00> : vector<8x128xf32>
    %77 = tpu.matmul %74, %76, %cst_64 {dimension_numbers = #tpu.dot_dimension_numbers<[1], [0], [0], [1], [0, 0, 1, 1], [], []>} : vector<8x72xbf16>, vector<72x128xbf16>, vector<8x128xf32> -> vector<8x128xf32>
    %78 = arith.addf %73, %77 : vector<8x128xf32>
    %c1_65 = arith.constant 1 : index
    %c0_66 = arith.constant 0 : index
    %79 = vector.load %arg7[%c1_65, %c0_66] : memref<5x144xf32, #tpu.memory_space<vmem>>, vector<1x144xf32>
    %80 = vector.extract_strided_slice %79 {offsets = [0, 0], sizes = [1, 128], strides = [1, 1]} : vector<1x144xf32> to vector<1x128xf32>
    %81 = vector.broadcast %80 : vector<1x128xf32> to vector<8x128xf32>
    %82 = arith.addf %78, %81 : vector<8x128xf32>
    %83 = arith.truncf %82 : vector<8x128xf32> to vector<8x128xbf16>
    %c2_67 = arith.constant 2 : index
    %c0_68 = arith.constant 0 : index
    %c0_69 = arith.constant 0 : index
    %84 = vector.load %arg4[%c2_67, %c0_68, %c0_69] : memref<4x12x24xbf16, #tpu.memory_space<vmem>>, vector<1x12x24xbf16>
    %85 = vector.shape_cast %84 : vector<1x12x24xbf16> to vector<12x24xbf16>
    %86 = vector.extract_strided_slice %85 {offsets = [0, 0], sizes = [4, 8], strides = [1, 1]} : vector<12x24xbf16> to vector<4x8xbf16>
    %c3_70 = arith.constant 3 : index
    %c0_71 = arith.constant 0 : index
    %c0_72 = arith.constant 0 : index
    %87 = vector.load %arg4[%c3_70, %c0_71, %c0_72] : memref<4x12x24xbf16, #tpu.memory_space<vmem>>, vector<1x12x24xbf16>
    %88 = vector.shape_cast %87 : vector<1x12x24xbf16> to vector<12x24xbf16>
    %89 = vector.extract_strided_slice %88 {offsets = [0, 0], sizes = [4, 8], strides = [1, 1]} : vector<12x24xbf16> to vector<4x8xbf16>
    %cst_73 = arith.constant dense<0.000000e+00> : vector<4x128xf32>
    %90 = tpu.matmul %86, %83, %cst_73 {dimension_numbers = #tpu.dot_dimension_numbers<[1], [0], [0], [1], [0, 0, 1, 1], [], []>} : vector<4x8xbf16>, vector<8x128xbf16>, vector<4x128xf32> -> vector<4x128xf32>
    %cst_74 = arith.constant dense<0.000000e+00> : vector<4x128xf32>
    %91 = tpu.matmul %89, %83, %cst_74 {dimension_numbers = #tpu.dot_dimension_numbers<[1], [0], [0], [1], [0, 0, 1, 1], [], []>} : vector<4x8xbf16>, vector<8x128xbf16>, vector<4x128xf32> -> vector<4x128xf32>
    %92 = arith.maximumf %90, %91 : vector<4x128xf32>
    %93 = arith.truncf %92 : vector<4x128xf32> to vector<4x128xbf16>
    %c2_75 = arith.constant 2 : index
    %c0_76 = arith.constant 0 : index
    %c0_77 = arith.constant 0 : index
    %94 = vector.load %arg3[%c2_75, %c0_76, %c0_77] : memref<4x144x72xbf16, #tpu.memory_space<vmem>>, vector<1x144x72xbf16>
    %95 = vector.shape_cast %94 : vector<1x144x72xbf16> to vector<144x72xbf16>
    %96 = vector.extract_strided_slice %95 {offsets = [0, 0], sizes = [128, 64], strides = [1, 1]} : vector<144x72xbf16> to vector<128x64xbf16>
    %c3_78 = arith.constant 3 : index
    %c0_79 = arith.constant 0 : index
    %c0_80 = arith.constant 0 : index
    %97 = vector.load %arg3[%c3_78, %c0_79, %c0_80] : memref<4x144x72xbf16, #tpu.memory_space<vmem>>, vector<1x144x72xbf16>
    %98 = vector.shape_cast %97 : vector<1x144x72xbf16> to vector<144x72xbf16>
    %99 = vector.extract_strided_slice %98 {offsets = [0, 0], sizes = [128, 64], strides = [1, 1]} : vector<144x72xbf16> to vector<128x64xbf16>
    %cst_81 = arith.constant dense<0.000000e+00> : vector<4x64xf32>
    %100 = tpu.matmul %93, %96, %cst_81 {dimension_numbers = #tpu.dot_dimension_numbers<[1], [0], [0], [1], [0, 0, 1, 1], [], []>} : vector<4x128xbf16>, vector<128x64xbf16>, vector<4x64xf32> -> vector<4x64xf32>
    %cst_82 = arith.constant dense<0.000000e+00> : vector<4x64xf32>
    %101 = tpu.matmul %93, %99, %cst_82 {dimension_numbers = #tpu.dot_dimension_numbers<[1], [0], [0], [1], [0, 0, 1, 1], [], []>} : vector<4x128xbf16>, vector<128x64xbf16>, vector<4x64xf32> -> vector<4x64xf32>
    %102 = arith.maximumf %100, %101 : vector<4x64xf32>
    %cst_83 = arith.constant 0.000000e+00 : f32
    %103 = vector.broadcast %cst_83 : f32 to vector<4x64xf32>
    %104 = arith.maximumf %102, %103 : vector<4x64xf32>
    %105 = arith.truncf %104 : vector<4x64xf32> to vector<4x64xbf16>
    %c2_84 = arith.constant 2 : index
    %c0_85 = arith.constant 0 : index
    %106 = vector.load %arg7[%c2_84, %c0_85] : memref<5x144xf32, #tpu.memory_space<vmem>>, vector<1x144xf32>
    %107 = vector.extract_strided_slice %106 {offsets = [0, 0], sizes = [1, 128], strides = [1, 1]} : vector<1x144xf32> to vector<1x128xf32>
    %108 = vector.extract_strided_slice %105 {offsets = [0, 0], sizes = [1, 64], strides = [1, 1]} : vector<4x64xbf16> to vector<1x64xbf16>
    %c0_86 = arith.constant 0 : index
    %c0_87 = arith.constant 0 : index
    %c0_88 = arith.constant 0 : index
    %109 = vector.load %arg5[%c0_86, %c0_87, %c0_88] : memref<4x64x128xbf16, #tpu.memory_space<vmem>>, vector<1x64x128xbf16>
    %110 = vector.shape_cast %109 : vector<1x64x128xbf16> to vector<64x128xbf16>
    %cst_89 = arith.constant dense<0.000000e+00> : vector<1x128xf32>
    %111 = tpu.matmul %108, %110, %cst_89 {dimension_numbers = #tpu.dot_dimension_numbers<[1], [0], [0], [1], [0, 0, 1, 1], [], []>} : vector<1x64xbf16>, vector<64x128xbf16>, vector<1x128xf32> -> vector<1x128xf32>
    %112 = arith.addf %107, %111 : vector<1x128xf32>
    %113 = vector.extract_strided_slice %105 {offsets = [1, 0], sizes = [1, 64], strides = [1, 1]} : vector<4x64xbf16> to vector<1x64xbf16>
    %c1_90 = arith.constant 1 : index
    %c0_91 = arith.constant 0 : index
    %c0_92 = arith.constant 0 : index
    %114 = vector.load %arg5[%c1_90, %c0_91, %c0_92] : memref<4x64x128xbf16, #tpu.memory_space<vmem>>, vector<1x64x128xbf16>
    %115 = vector.shape_cast %114 : vector<1x64x128xbf16> to vector<64x128xbf16>
    %cst_93 = arith.constant dense<0.000000e+00> : vector<1x128xf32>
    %116 = tpu.matmul %113, %115, %cst_93 {dimension_numbers = #tpu.dot_dimension_numbers<[1], [0], [0], [1], [0, 0, 1, 1], [], []>} : vector<1x64xbf16>, vector<64x128xbf16>, vector<1x128xf32> -> vector<1x128xf32>
    %117 = arith.addf %112, %116 : vector<1x128xf32>
    %118 = vector.extract_strided_slice %105 {offsets = [2, 0], sizes = [1, 64], strides = [1, 1]} : vector<4x64xbf16> to vector<1x64xbf16>
    %c2_94 = arith.constant 2 : index
    %c0_95 = arith.constant 0 : index
    %c0_96 = arith.constant 0 : index
    %119 = vector.load %arg5[%c2_94, %c0_95, %c0_96] : memref<4x64x128xbf16, #tpu.memory_space<vmem>>, vector<1x64x128xbf16>
    %120 = vector.shape_cast %119 : vector<1x64x128xbf16> to vector<64x128xbf16>
    %cst_97 = arith.constant dense<0.000000e+00> : vector<1x128xf32>
    %121 = tpu.matmul %118, %120, %cst_97 {dimension_numbers = #tpu.dot_dimension_numbers<[1], [0], [0], [1], [0, 0, 1, 1], [], []>} : vector<1x64xbf16>, vector<64x128xbf16>, vector<1x128xf32> -> vector<1x128xf32>
    %122 = arith.addf %117, %121 : vector<1x128xf32>
    %123 = vector.extract_strided_slice %105 {offsets = [3, 0], sizes = [1, 64], strides = [1, 1]} : vector<4x64xbf16> to vector<1x64xbf16>
    %c3_98 = arith.constant 3 : index
    %c0_99 = arith.constant 0 : index
    %c0_100 = arith.constant 0 : index
    %124 = vector.load %arg5[%c3_98, %c0_99, %c0_100] : memref<4x64x128xbf16, #tpu.memory_space<vmem>>, vector<1x64x128xbf16>
    %125 = vector.shape_cast %124 : vector<1x64x128xbf16> to vector<64x128xbf16>
    %cst_101 = arith.constant dense<0.000000e+00> : vector<1x128xf32>
    %126 = tpu.matmul %123, %125, %cst_101 {dimension_numbers = #tpu.dot_dimension_numbers<[1], [0], [0], [1], [0, 0, 1, 1], [], []>} : vector<1x64xbf16>, vector<64x128xbf16>, vector<1x128xf32> -> vector<1x128xf32>
    %127 = arith.addf %122, %126 : vector<1x128xf32>
    %cst_102 = arith.constant 0.000000e+00 : f32
    %128 = vector.broadcast %cst_102 : f32 to vector<1x128xf32>
    %129 = arith.maximumf %127, %128 : vector<1x128xf32>
    %130 = arith.truncf %129 : vector<1x128xf32> to vector<1x128xbf16>
    %c0_103 = arith.constant 0 : index
    %c0_104 = arith.constant 0 : index
    %c0_105 = arith.constant 0 : index
    %131 = vector.load %arg6[%c0_103, %c0_104, %c0_105] : memref<2x128x128xbf16, #tpu.memory_space<vmem>>, vector<1x128x128xbf16>
    %132 = vector.shape_cast %131 : vector<1x128x128xbf16> to vector<128x128xbf16>
    %cst_106 = arith.constant dense<0.000000e+00> : vector<1x128xf32>
    %133 = tpu.matmul %130, %132, %cst_106 {dimension_numbers = #tpu.dot_dimension_numbers<[1], [0], [0], [1], [0, 0, 1, 1], [], []>} : vector<1x128xbf16>, vector<128x128xbf16>, vector<1x128xf32> -> vector<1x128xf32>
    %c3_107 = arith.constant 3 : index
    %c0_108 = arith.constant 0 : index
    %134 = vector.load %arg7[%c3_107, %c0_108] : memref<5x144xf32, #tpu.memory_space<vmem>>, vector<1x144xf32>
    %135 = vector.extract_strided_slice %134 {offsets = [0, 0], sizes = [1, 128], strides = [1, 1]} : vector<1x144xf32> to vector<1x128xf32>
    %136 = arith.addf %133, %135 : vector<1x128xf32>
    %cst_109 = arith.constant 0.000000e+00 : f32
    %137 = vector.broadcast %cst_109 : f32 to vector<1x128xf32>
    %138 = arith.maximumf %136, %137 : vector<1x128xf32>
    %139 = arith.truncf %138 : vector<1x128xf32> to vector<1x128xbf16>
    %c1_110 = arith.constant 1 : index
    %c0_111 = arith.constant 0 : index
    %c0_112 = arith.constant 0 : index
    %140 = vector.load %arg6[%c1_110, %c0_111, %c0_112] : memref<2x128x128xbf16, #tpu.memory_space<vmem>>, vector<1x128x128xbf16>
    %141 = vector.shape_cast %140 : vector<1x128x128xbf16> to vector<128x128xbf16>
    %cst_113 = arith.constant dense<0.000000e+00> : vector<1x128xf32>
    %142 = tpu.matmul %139, %141, %cst_113 {dimension_numbers = #tpu.dot_dimension_numbers<[1], [0], [0], [1], [0, 0, 1, 1], [], []>} : vector<1x128xbf16>, vector<128x128xbf16>, vector<1x128xf32> -> vector<1x128xf32>
    %c4_114 = arith.constant 4 : index
    %c0_115 = arith.constant 0 : index
    %143 = vector.load %arg7[%c4_114, %c0_115] : memref<5x144xf32, #tpu.memory_space<vmem>>, vector<1x144xf32>
    %144 = vector.extract_strided_slice %143 {offsets = [0, 0], sizes = [1, 128], strides = [1, 1]} : vector<1x144xf32> to vector<1x128xf32>
    %145 = arith.addf %142, %144 : vector<1x128xf32>
    %cst_116 = arith.constant 0.000000e+00 : f32
    %146 = vector.broadcast %cst_116 : f32 to vector<1x128xf32>
    %147 = arith.subf %146, %145 : vector<1x128xf32>
    %148 = math.exp %147 : vector<1x128xf32>
    %cst_117 = arith.constant 1.000000e+00 : f32
    %149 = vector.broadcast %cst_117 : f32 to vector<1x128xf32>
    %150 = arith.addf %149, %148 : vector<1x128xf32>
    %cst_118 = arith.constant 1.000000e+00 : f32
    %151 = vector.broadcast %cst_118 : f32 to vector<1x128xf32>
    %152 = arith.divf %151, %150 : vector<1x128xf32>
    %c0_119 = arith.constant 0 : index
    %c0_120 = arith.constant 0 : index
    %153 = vector.load %arg8[%c0_119, %c0_120] : memref<1x128xf32, #tpu.memory_space<vmem>>, vector<1x128xf32>
    tpu.vector_store %arg8[%c0_119, %c0_120], %152 {strides = array<i32>} : memref<1x128xf32, #tpu.memory_space<vmem>>, vector<1x128xf32>,
    return
  }
}

</mosaic_0001>

<bundles_post_ra>
// kernel: dangerdist_cnn_forward.1
= control target key start
LH: loop header
LB: loop body
LE: loop exit
PB: predicated region body
PF: predicated region fallthrough
CT: control target
= control target key end

     0   :  { %13 = vsyncpa [#allocation3], 0  ;;  %s3469_s0 = inlined_call_operand.vmem [shape: f32[28,28], index: 0, kind: input, shape index: {}]   ;;  %s3470_s1 = inlined_call_operand.hbm [shape: bf16[5,28,144], index: 1, kind: input, shape index: {}]   ;;  %s3471_s2 = inlined_call_operand.hbm [shape: bf16[5,72,128], index: 2, kind: input, shape index: {}]   ;;  %s3472_s3 = inlined_call_operand.hbm [shape: bf16[4,144,72], index: 3, kind: input, shape index: {}]   ;;  %s3473_s4 = inlined_call_operand.vmem [shape: bf16[4,12,24], index: 4, kind: input, shape index: {}]   ;;  %s3474_s5 = inlined_call_operand.vmem [shape: bf16[4,64,128], index: 5, kind: input, shape index: {}]   ;;  %s3475_s6 = inlined_call_operand.hbm [shape: bf16[2,128,128], index: 6, kind: input, shape index: {}]   ;;  %s3476_s7 = inlined_call_operand.hbm [shape: f32[5,144], index: 7, kind: input, shape index: {}]   ;;  %s3477_s8 = inlined_call_operand.hbm [shape: f32[1,128], index: 8, kind: output, shape index: {}]  }
   0x1   :  { %14 = vsyncpa [#allocation6], 0 }
   0x2   :  { %15 = vsyncpa [#allocation9], 0 }
   0x3   :  { %16 = vsyncpa [#allocation4], 0  ;;  %s3037_s27 = smov [#allocation5]   ;;  %s2897_s9 = scalar_lea.hbm %s3471_s2, 2880 }
   0x4   :  { %s36_s28 = sshll.u32 %s3037_s27, 4  ;;  %p2898_p0 = scmp.ne.s32.totalorder %s3471_s2, %s2897_s9  ;;  %s37_s28 = int_to_ptr.vmem [resolvable:$true] %s36_s28 }
   0x5   :  { %p2901_p1 = scmp.lt.u32.totalorder %s2897_s9, %s3471_s2 }
   0x7   :  { %p2903_p2 = pnand %p2901_p1, %p2898_p0 }
   0x9   :  { %2906 = shalt.err (!%p2903_p2)
}
   0xa   :  { %s2907_s14 = scalar_lea.vmem %s37_s28, 2880  ;;  %p2912_p4 = scmp.lt.s32.totalorder %s37_s28, %s37_s28 }
   0xb   :  { %p2908_p3 = scmp.ne.s32.totalorder %s37_s28, %s2907_s14  ;;  %p2913_p5 = scmp.lt.s32.totalorder %s2907_s14, %s2907_s14 }
   0xd   :  { %p2914_p6 = por %p2913_p5, %p2912_p4 }
   0xf   :  { %p2915_p7 = pnand %p2914_p6, %p2908_p3 }
  0x11   :  { %2918 = shalt.err (!%p2915_p7)
}
  0x12   :  { %s3038_s15 = smov 64   ;;  %s3039_s16 = smov 4  }
  0x13   :  { %42 = dma.hbm_to_vmem [thread:$0]  %s3471_s2, 2880, %s37_s28, [#allocation6], %s3038_s15, %s3038_s15, %s3039_s16  }
  0x14   :  { %s3040_s19 = smov [#allocation8]   ;;  %s3041_s21 = smov [#allocation2]  }
  0x15   :  { %s64_s20 = sshll.u32 %s3040_s19, 4  ;;  %s24_s22 = sshll.u32 %s3041_s21, 4  ;;  %s65_s20 = int_to_ptr.vmem [resolvable:$true] %s64_s20  ;;  %s25_s22 = int_to_ptr.vmem [resolvable:$true] %s24_s22 }
  0x16   :  { %s2919_s25 = scalar_lea.hbm %s3475_s6, 2048 }
  0x17   :  { %p2920_p8 = scmp.ne.s32.totalorder %s3475_s6, %s2919_s25  ;;  %p2923_p9 = scmp.lt.u32.totalorder %s2919_s25, %s3475_s6 }
  0x19   :  { %p2925_p10 = pnand %p2923_p9, %p2920_p8 }
  0x1b   :  { %2928 = shalt.err (!%p2925_p10)
}
  0x1c   :  { %s2929_s2 = scalar_lea.vmem %s65_s20, 2048  ;;  %p2934_p12 = scmp.lt.s32.totalorder %s65_s20, %s65_s20 }
  0x1d   :  { %p2930_p11 = scmp.ne.s32.totalorder %s65_s20, %s2929_s2  ;;  %p2935_p13 = scmp.lt.s32.totalorder %s2929_s2, %s2929_s2 }
  0x1f   :  { %p2936_p0 = por %p2935_p13, %p2934_p12 }
  0x21   :  { %p2937_p1 = pnand %p2936_p0, %p2930_p11 }
  0x23   :  { %2940 = shalt.err (!%p2937_p1)
}
  0x24   :  { %70 = dma.hbm_to_vmem [thread:$0]  %s3475_s6, 2048, %s65_s20, [#allocation9], %s3038_s15, %s3038_s15, %s3039_s16  }
  0x25   :  { %s2941_s12 = scalar_lea.hbm %s3470_s1, 2560 }
  0x26   :  { %p2942_p2 = scmp.ne.s32.totalorder %s3470_s1, %s2941_s12  ;;  %p2945_p3 = scmp.lt.u32.totalorder %s2941_s12, %s3470_s1 }
  0x28   :  { %p2947_p4 = pnand %p2945_p3, %p2942_p2 }
  0x2a   :  { %2950 = shalt.err (!%p2947_p4)
}
  0x2b   :  { %s2951_s19 = scalar_lea.vmem %s25_s22, 2560  ;;  %p2956_p6 = scmp.lt.s32.totalorder %s25_s22, %s25_s22 }
  0x2c   :  { %p2952_p5 = scmp.ne.s32.totalorder %s25_s22, %s2951_s19  ;;  %p2957_p7 = scmp.lt.s32.totalorder %s2951_s19, %s2951_s19 }
  0x2e   :  { %p2958_p8 = por %p2957_p7, %p2956_p6 }
  0x30   :  { %p2959_p9 = pnand %p2958_p8, %p2952_p5 }
  0x32   :  { %2962 = shalt.err (!%p2959_p9)
}
  0x33   :  { %s3042_s6 = smov 128   ;;  %s3043_s20 = smov 8  }
  0x34   :  { %30 = dma.hbm_to_vmem [thread:$0]  %s3470_s1, 2560, %s25_s22, [#allocation3], %s3042_s6, %s3042_s6, %s3043_s20  }
  0x35   :  { %s3044_s24 = smov [#allocation7]   ;;  %s3045_s26 = smov [#allocation10]  }
  0x36   :  { %s48_s25 = sshll.u32 %s3044_s24, 4  ;;  %s77_s27 = sshll.u32 %s3045_s26, 4  ;;  %s49_s25 = int_to_ptr.vmem [resolvable:$true] %s48_s25  ;;  %s78_s27 = int_to_ptr.vmem [resolvable:$true] %s77_s27 }
  0x37   :  { %s2963_s2 = scalar_lea.hbm %s3472_s3, 4608 }
  0x38   :  { %p2964_p10 = scmp.ne.s32.totalorder %s3472_s3, %s2963_s2  ;;  %p2967_p11 = scmp.lt.u32.totalorder %s2963_s2, %s3472_s3 }
  0x3a   :  { %p2969_p12 = pnand %p2967_p11, %p2964_p10 }
  0x3c   :  { %2972 = shalt.err (!%p2969_p12)
}
  0x3d   :  { %s2973_s1 = scalar_lea.vmem %s49_s25, 4608  ;;  %p2978_p0 = scmp.lt.s32.totalorder %s49_s25, %s49_s25 }
  0x3e   :  { %p2974_p13 = scmp.ne.s32.totalorder %s49_s25, %s2973_s1  ;;  %p2979_p1 = scmp.lt.s32.totalorder %s2973_s1, %s2973_s1 }
  0x40   :  { %p2980_p2 = por %p2979_p1, %p2978_p0 }
  0x42   :  { %p2981_p3 = pnand %p2980_p2, %p2974_p13 }
  0x44   :  { %2984 = shalt.err (!%p2981_p3)
}
  0x45   :  { %54 = dma.hbm_to_vmem [thread:$0]  %s3472_s3, 4608, %s49_s25, [#allocation6], %s3038_s15, %s3038_s15, %s3039_s16  }
  0x46   :  { %s2985_s17 = scalar_lea.hbm %s3476_s7, 256 }
  0x47   :  { %p2986_p4 = scmp.ne.s32.totalorder %s3476_s7, %s2985_s17  ;;  %p2989_p5 = scmp.lt.u32.totalorder %s2985_s17, %s3476_s7 }
  0x49   :  { %p2991_p6 = pnand %p2989_p5, %p2986_p4 }
  0x4b   :  { %2994 = shalt.err (!%p2991_p6)
}
  0x4c   :  { %s2995_s21 = scalar_lea.vmem %s78_s27, 256  ;;  %p3000_p8 = scmp.lt.s32.totalorder %s78_s27, %s78_s27 }
  0x4d   :  { %p2996_p7 = scmp.ne.s32.totalorder %s78_s27, %s2995_s21  ;;  %p3001_p9 = scmp.lt.s32.totalorder %s2995_s21, %s2995_s21 }
  0x4f   :  { %p3002_p10 = por %p3001_p9, %p3000_p8 }
  0x51   :  { %p3003_p11 = pnand %p3002_p10, %p2996_p7 }
  0x53   :  { %3006 = shalt.err (!%p3003_p11)
}
  0x54   :  { %80 = dma.hbm_to_vmem [thread:$0]  %s3476_s7, 256, %s78_s27, [#allocation9]  }
  0x55   :  { %3029 = dma.done.wait [#allocation3], 2560  }
  0x56   :  { %3030 = vsyncadd [#allocation3], 4294964736 }
  0x57   :  { %3031 = dma.done.wait [#allocation6], 7488  }
  0x58   :  { %3032 = vsyncadd [#allocation6], 4294959808 }
  0x59   :  { %3033 = dma.done.wait [#allocation9], 2304  }
  0x5a   :  { %3034 = vsyncadd [#allocation9], 4294964992  ;;  %v3046_v0 = vmov 0   ;;  %v2770_v1 = vld [vmem:[#allocation2 + $0x24] ss:$8 sps:$4 sm:$0xff]   ;;  %vm141_vm0 = vcmask 1045504  }
  0x5b   :  { %180 = vmatprep.mubr.bf16.mxu0 %v3046_v0  ;;  %643 = vmatprep.mubr.bf16.mxu1 %v3046_v0  ;;  %v2772_v2 = vld [vmem:[#allocation2 + $0x20] ss:$8 sps:$4 sm:$0xff]   ;;  %v2773_v3 = vld [vmem:[#allocation2 + $0x34] ss:$8 sps:$4 sm:$0x3f]   ;;  %vm134_vm1 = vcmask 228352  }
  0x5c   :  { %148 = vmatprep.subr.bf16.mxu0 %v2770_v1  ;;  %v2775_v4 = vld [vmem:[#allocation2 + $0x30] ss:$8 sps:$4 sm:$0x3f]   ;;  %v106_v5 = vld [vmem:[%s3469_s0 + $0x1] sm:$0xff]  ;;  %vm604_vm2 = vcmask 1043456   ;;  %vm600_vm3 = vcmask 195584  }
  0x5d   :  { %149 = vmatpush1.bf16.msra.mxu0 %v2772_v2  ;;  %v107_v6 = vld [vmem:[%s3469_s0 + $0x9] sm:$0xff]  ;;  %v143_v7 = vsel %vm141_vm0, %v2775_v4, 0  ;;  %v2779_v11 = vld [vmem:[#allocation2 + $0x14] ss:$8 sps:$4 sm:$0x3f]   ;;  %v97_v20 = vld [vmem:[%s3469_s0] sm:$0xff]  ;;  %v573_v4 = vlaneseq }
  0x5e   :  { %2259 = vmatprep.subr.msk.bf16.mxu0 %vm141_vm0, %v2773_v3  ;;  %v2778_v8 = vld [vmem:[#allocation2 + $0x4] ss:$8 sps:$4 sm:$0xff]   ;;  %v109_v9 = vpack.c.bf16 %v107_v6, %v106_v5  ;;  %v2776_v10 = vld [vmem:[#allocation2] ss:$8 sps:$4 sm:$0xff]   ;;  %v108_v13 = vld [vmem:[%s3469_s0 + $0x11] sm:$0xff]  ;;  %vm786_vm4 = vcmask 130048  }
  0x5f   :  { %v2781_v12 = vld [vmem:[#allocation2 + $0x10] ss:$8 sps:$4 sm:$0x3f]   ;;  %v2784_v15 = vld [vmem:[#allocation2 + $0x44] ss:$8 sps:$4 sm:$0xff]   ;;  %v110_v16 = vpack.c.bf16 %v108_v13, %v108_v13  ;;  %v3240_v5 = vshrl.u32 %v573_v4, 7 }
  0x60   :  { %v224_v14 = vsel %vm141_vm0, %v2781_v12, 0  ;;  %v2787_v17 = vld [vmem:[#allocation2 + $0x50] ss:$8 sps:$4 sm:$0x3f]   ;;  %v98_v21 = vld [vmem:[%s3469_s0 + $0x8] sm:$0xff]  ;;  %v2815_v4 = vld [vmem:[#allocation7 + $0x68] sm:$0xff]  }
  0x61   :  { %151 = vmatpush1.bf16.msra.mxu0 %v143_v7  ;;  %v2793_v18 = vld [vmem:[#allocation2 + $0x70] ss:$8 sps:$4 sm:$0x3f]   ;;  %v315_v22 = vsel %vm141_vm0, %v2787_v17, 0  ;;  %v2782_v25 = vld [vmem:[#allocation2 + $0x40] ss:$8 sps:$4 sm:$0xff]   ;;  %v100_v26 = vpack.c.bf16 %v98_v21, %v97_v20 }
  0x62   :  { %229 = vmatprep.subr.bf16.mxu0 %v2778_v8  ;;  %v2799_v19 = vld [vmem:[#allocation2 + $0x90] ss:$8 sps:$4 sm:$0x3f]   ;;  %v412_v23 = vsel %vm141_vm0, %v2793_v18, 0  ;;  %v2790_v29 = vld [vmem:[#allocation2 + $0x64] ss:$8 sps:$4 sm:$0xff]  }
  0x63   :  { %v509_v24 = vsel %vm141_vm0, %v2799_v19, 0  ;;  %v2785_v27 = vld [vmem:[#allocation2 + $0x54] ss:$8 sps:$4 sm:$0x3f]   ;;  %v280_v31 = vld [vmem:[%s3469_s0 + $0x2] sm:$0xff]  ;;  %v281_v32 = vld [vmem:[%s3469_s0 + $0xa] sm:$0xff] }
  0x64   :  { %2260 = vmatmul.mubr.msk.bf16.vlgmr.msra.gmra.mrb[0].mxu0 %vm134_vm1, %v109_v9  ;;  %v99_v28 = vld [vmem:[%s3469_s0 + $0x10] sm:$0xff]  ;;  %v2788_v33 = vld [vmem:[#allocation2 + $0x60] ss:$8 sps:$4 sm:$0xff]   ;;  %v283_v34 = vpack.c.bf16 %v281_v32, %v280_v31  ;;  %v2796_v37 = vld [vmem:[#allocation2 + $0x84] ss:$8 sps:$4 sm:$0xff]   ;;  %v575_v12 = vsub.s32 0, %v3240_v5 }
  0x65   :  { %230 = vmatpush1.bf16.msra.mxu0 %v2776_v10  ;;  %190 = vmatprep.mubr.bf16.mxu0 %v3046_v0  ;;  %v101_v30 = vpack.c.bf16 %v99_v28, %v99_v28  ;;  %v2791_v35 = vld [vmem:[#allocation2 + $0x74] ss:$8 sps:$4 sm:$0x3f]   ;;  %v377_v39 = vld [vmem:[%s3469_s0 + $0x3] sm:$0xff]  ;;  %v378_v40 = vld [vmem:[%s3469_s0 + $0xb] sm:$0xff]  ;;  %vm3048_vm5 = vmmov 0  }
  0x66   :  { %2266 = vmatprep.subr.msk.bf16.mxu0 %vm141_vm0, %v2779_v11  ;;  %v282_v36 = vld [vmem:[%s3469_s0 + $0x12] sm:$0xff]  ;;  %v2794_v41 = vld [vmem:[#allocation2 + $0x80] ss:$8 sps:$4 sm:$0xff]   ;;  %v380_v42 = vpack.c.bf16 %v378_v40, %v377_v39  ;;  %vm1003_vm6 = vcmask 588800   ;;  %vm1394_vm7 = vcmask 64512   ;;  %vm1733_vm8 = vcmask 523264  }
  0x67   :  { %v284_v38 = vpack.c.bf16 %v282_v36, %v282_v36  ;;  %v2797_v43 = vld [vmem:[#allocation2 + $0x94] ss:$8 sps:$4 sm:$0x3f]   ;;  %v474_v46 = vld [vmem:[%s3469_s0 + $0x4] sm:$0xff]  ;;  %v475_v47 = vld [vmem:[%s3469_s0 + $0xc] sm:$0xff] }
  0x68   :  { %v379_v44 = vld [vmem:[%s3469_s0 + $0x13] sm:$0xff]  ;;  %v477_v48 = vpack.c.bf16 %v475_v47, %v474_v46  ;;  %v2801_v39 = vld [vmem:[%s3473_s4 + $0x8] sm:$0x3f]  }
  0x69   :  { %232 = vmatpush1.bf16.msra.mxu0 %v224_v14  ;;  %v381_v45 = vpack.c.bf16 %v379_v44, %v379_v44  ;;  %v476_v49 = vld [vmem:[%s3469_s0 + $0x14] sm:$0xff]  ;;  %v579_v14 = vsub.s32 1, %v3240_v5  ;;  %v2808_v46 = vld [vmem:[#allocation7 + $0x30] sm:$0xff]   ;;  %v2809_v47 = vld [vmem:[#allocation7 + $0x38] sm:$0xff]  }
  0x6a   :  { %320 = vmatprep.subr.bf16.mxu0 %v2784_v15  ;;  %v478_v50 = vpack.c.bf16 %v476_v49, %v476_v49  ;;  %v571_v13 = vld [vmem:[#allocation10] ss:$8 sm:$0x3]  ;;  %v2349_v5 = vld [vmem:[%s3473_s4 + $0x18] sm:$0xf] }
  0x6b   :  { %v576_v15 = vrot.slane %v571_v13, %v575_v12  ;;  %v580_v17 = vrot.slane %v571_v13, %v579_v14  ;;  %v2802_v40 = vld [vmem:[#allocation7] sm:$0xff]   ;;  %v3047_v13 = vmov 0.0   ;;  %v2821_v14 = vld [vmem:[#allocation5 + $0x8] sm:$0xff]  }
  0x6c   :  { %2261 = vmatmul.mubr.msk.bf16.gmra.mrb[4].mxu0 %vm134_vm1, %v110_v16  ;;  %v2806_v44 = vld [vmem:[#allocation7 + $0x20] sm:$0xff]  }
  0x6d   :  { %261 = vmatprep.mubr.bf16.mxu0 %v3046_v0 }
  0x74   :  { %2267 = vmatmul.mubr.msk.bf16.vlgmr.msra.gmra.mrb[0].mxu0 %vm134_vm1, %v100_v26 }
  0x75   :  { %321 = vmatpush1.bf16.msra.mxu0 %v2782_v25  ;;  %271 = vmatprep.mubr.bf16.mxu0 %v3046_v0 }
  0x76   :  { %2273 = vmatprep.subr.msk.bf16.mxu0 %vm141_vm0, %v2785_v27 }
  0x79   :  { %323 = vmatpush1.bf16.msra.mxu0 %v315_v22 }
  0x7a   :  { %417 = vmatprep.subr.bf16.mxu0 %v2790_v29 }
  0x7c   :  { %2268 = vmatmul.mubr.msk.bf16.gmra.mrb[8].mxu0 %vm134_vm1, %v101_v30 }
  0x7d   :  { %352 = vmatprep.mubr.bf16.mxu0 %v3046_v0 }
  0x84   :  { %2274 = vmatmul.mubr.msk.bf16.vlgmr.msra.gmra.mrb[0].mxu0 %vm134_vm1, %v283_v34 }
  0x85   :  { %418 = vmatpush1.bf16.msra.mxu0 %v2788_v33  ;;  %362 = vmatprep.mubr.bf16.mxu0 %v3046_v0 }
  0x86   :  { %2280 = vmatprep.subr.msk.bf16.mxu0 %vm141_vm0, %v2791_v35 }
  0x89   :  { %420 = vmatpush1.bf16.msra.mxu0 %v412_v23 }
  0x8a   :  { %514 = vmatprep.subr.bf16.mxu0 %v2796_v37 }
  0x8c   :  { %2275 = vmatmul.mubr.msk.bf16.gmra.mrb[12].mxu0 %vm134_vm1, %v284_v38  ;;  %v2800_v38 = vld [vmem:[%s3473_s4] sm:$0x3f]  }
  0x8d   :  { %449 = vmatprep.mubr.bf16.mxu0 %v3046_v0 }
  0x94   :  { %2281 = vmatmul.mubr.msk.bf16.vlgmr.msra.gmra.mrb[0].mxu0 %vm134_vm1, %v380_v42  ;;  %v2804_v42 = vld [vmem:[#allocation7 + $0x10] sm:$0xff]  }
  0x95   :  { %515 = vmatpush1.bf16.msra.mxu0 %v2794_v41  ;;  %459 = vmatprep.mubr.bf16.mxu0 %v3046_v0  ;;  %v2803_v41 = vld [vmem:[#allocation7 + $0x8] sm:$0xff]  }
  0x96   :  { %2287 = vmatprep.subr.msk.bf16.mxu0 %vm141_vm0, %v2797_v43  ;;  %v2805_v43 = vld [vmem:[#allocation7 + $0x18] sm:$0xff]  }
  0x99   :  { %517 = vmatpush1.bf16.msra.mxu0 %v509_v24 }
  0x9a   :  { %2518 = vmatprep.subr.bf16.mxu0 %v3047_v13 }
  0x9c   :  { %2282 = vmatmul.mubr.msk.bf16.gmra.mrb[16].mxu0 %vm134_vm1, %v381_v45  ;;  %v2807_v45 = vld [vmem:[#allocation7 + $0x28] sm:$0xff]  }
  0x9d   :  { %546 = vmatprep.mubr.bf16.mxu0 %v3046_v0 }
  0xa4   :  { %2288 = vmatmul.mubr.msk.bf16.vlgmr.msra.gmra.mrb[0].mxu0 %vm134_vm1, %v477_v48  ;;  %v2810_v48 = vld [vmem:[#allocation7 + $0x40] sm:$0xff]  }
  0xa5   :  { %556 = vmatprep.mubr.bf16.mxu0 %v3046_v0 }
  0xac   :  { %2289 = vmatmul.mubr.msk.bf16.gmra.mrb[20].mxu0 %vm134_vm1, %v478_v50 }
  0xad   :  { %2528 = vmatprep.mubr.msk.bf16.mxu0 %vm3048_vm5, %v3047_v13 }
 0x13f   :  { %v192_v51 = vpop.f32.mrb[4].mxu0 }
 0x140   :  { %v194_v52 = vpop.f32.mrb[5].mxu0 }
 0x141   :  { %v196_v53 = vpop.f32.mrb[6].mxu0 }
 0x142   :  { %v197_v54 = vpop.f32.mrb[7].mxu0 }
 0x14f   :  { %v273_v55 = vpop.f32.mrb[8].mxu0 }
 0x150   :  { %v274_v56 = vadd.f32 %v273_v55, %v192_v51  ;;  %v275_v57 = vpop.f32.mrb[9].mxu0 }
 0x151   :  { %v276_v58 = vadd.f32 %v275_v57, %v194_v52  ;;  %v277_v59 = vpop.f32.mrb[10].mxu0 }
 0x152   :  { %v278_v60 = vpop.f32.mrb[11].mxu0 }
 0x15f   :  { %v364_v61 = vpop.f32.mrb[12].mxu0 }
 0x160   :  { %v375_v62 = vadd.f32 %v364_v61, %v274_v56  ;;  %v366_v63 = vpop.f32.mrb[13].mxu0 }
 0x161   :  { %v376_v1 = vadd.f32 %v366_v63, %v276_v58  ;;  %v368_v2 = vpop.f32.mrb[14].mxu0  ;;  %v2811_v63 = vld [vmem:[#allocation7 + $0x48] sm:$0xff]  }
 0x162   :  { %v369_v3 = vpop.f32.mrb[15].mxu0  ;;  %v2813_v2 = vld [vmem:[#allocation7 + $0x58] sm:$0xff]  }
 0x163   :  { %v2814_v3 = vld [vmem:[#allocation7 + $0x60] sm:$0xff]  }
 0x16f   :  { %v461_v6 = vpop.f32.mrb[16].mxu0 }
 0x170   :  { %v472_v7 = vadd.f32 %v461_v6, %v375_v62  ;;  %v463_v8 = vpop.f32.mrb[17].mxu0  ;;  %v2816_v6 = vld [vmem:[#allocation7 + $0x70] sm:$0xff]  }
 0x171   :  { %v473_v9 = vadd.f32 %v463_v8, %v376_v1  ;;  %v465_v10 = vpop.f32.mrb[18].mxu0  ;;  %v2812_v1 = vld [vmem:[#allocation7 + $0x50] sm:$0xff]   ;;  %v2818_v8 = vld [vmem:[#allocation7 + $0x80] sm:$0xff]  }
 0x172   :  { %v466_v11 = vpop.f32.mrb[19].mxu0  ;;  %v2820_v10 = vld [vmem:[#allocation5] sm:$0xff]  }
 0x173   :  { %v2822_v11 = vld [vmem:[#allocation5 + $0x24] sm:$0xff]  }
 0x174   :  { %2519 = vmatpush3.bf16.msra.mxu0 %v2822_v11 }
 0x175   :  { %2520 = vmatprep.subr.bf16.mxu0 %v3047_v13 }
 0x177   :  { %v548_v16 = vpop.f32.mrb[0].mxu0 }
 0x178   :  { %v550_v18 = vpop.f32.mrb[1].mxu0  ;;  %v583_v20 = vadd.f32 %v576_v15, %v548_v16  ;;  %v2823_v16 = vld [vmem:[#allocation5 + $0x10] sm:$0xff]  }
 0x179   :  { %v552_v19 = vpop.f32.mrb[2].mxu0  ;;  %v584_v23 = vadd.f32 %v580_v17, %v550_v18  ;;  %v2827_v18 = vld [vmem:[#allocation5 + $0x20] ss:$0 sps:$4 sm:$0xff]  }
 0x17a   :  { %v585_v21 = vadd.f32 %v576_v15, %v552_v19  ;;  %v554_v22 = vpop.f32.mrb[3].mxu0  ;;  %v1080_v19 = vsel %vm604_vm2, %v2827_v18, 0 }
 0x17b   :  { %v586_v24 = vadd.f32 %v580_v17, %v554_v22 }
 0x17c   :  { %v589_v25 = vpack.c.bf16 %v585_v21, %v583_v20  ;;  %v2828_v20 = vld [vmem:[#allocation5 + $0x3c] sm:$0xff]   ;;  %v2830_v21 = vld [vmem:[#allocation5 + $0x44] ss:$0 sps:$4 sm:$0xff]  }
 0x17d   :  { %v590_v26 = vpack.c.bf16 %v586_v24, %v584_v23  ;;  %v1008_v22 = vsel %vm604_vm2, %v2830_v21, 0  ;;  %v1381_v21 = vld [vmem:[#allocation10 + $0x1] ss:$8 sm:$0x3] }
 0x17f   :  { %v558_v27 = vpop.f32.mrb[20].mxu0  ;;  %611 = vmatprep.subr.bf16.mxu1 %v590_v26 }
 0x180   :  { %v569_v28 = vadd.f32 %v558_v27, %v472_v7  ;;  %v560_v29 = vpop.f32.mrb[21].mxu0  ;;  %612 = vmatpush1.bf16.msra.mxu1 %v589_v25  ;;  %v2817_v7 = vld [vmem:[#allocation7 + $0x78] sm:$0xff]  }
 0x181   :  { %v570_v30 = vadd.f32 %v560_v29, %v473_v9  ;;  %v562_v31 = vpop.f32.mrb[22].mxu0  ;;  %v2819_v9 = vld [vmem:[#allocation7 + $0x88] sm:$0xff]  }
 0x182   :  { %v587_v32 = vadd.f32 %v576_v15, %v569_v28  ;;  %v563_v33 = vpop.f32.mrb[23].mxu0  ;;  %v2824_v15 = vld [vmem:[#allocation5 + $0x2c] sm:$0xff]  }
 0x183   :  { %v588_v34 = vadd.f32 %v580_v17, %v570_v30  ;;  %2521 = vmatpush3.bf16.msra.mxu0 %v2824_v15  ;;  %v2826_v17 = vld [vmem:[#allocation5 + $0x34] sm:$0xff]  }
 0x184   :  { %v591_v35 = vpack.c.bf16 %v587_v32, %v587_v32  ;;  %2522 = vmatprep.subr.bf16.mxu0 %v3047_v13 }
 0x185   :  { %v592_v36 = vpack.c.bf16 %v588_v34, %v588_v34 }
 0x186   :  { %v606_v37 = vsel %vm604_vm2, %v591_v35, 0  ;;  %v2829_v35 = vld [vmem:[#allocation5 + $0x6c] sm:$0xff]  }
 0x187   :  { %2291 = vmatprep.subr.msk.bf16.mxu1 %vm604_vm2, %v592_v36  ;;  %2523 = vmatpush3.bf16.msra.mxu0 %v2826_v17 }
 0x188   :  { %614 = vmatpush1.bf16.msra.mxu1 %v606_v37  ;;  %2524 = vmatprep.subr.bf16.mxu0 %v3047_v13 }
 0x189   :  { %665 = vmatprep.subr.bf16.mxu1 %v590_v26 }
 0x18b   :  { %2292 = vmatmul.mubr.msk.bf16.vlgmr.msra.gmra.mrb[0].mxu1 %vm600_vm3, %v2800_v38  ;;  %2525 = vmatpush3.bf16.msra.mxu0 %v2828_v20  ;;  %v2831_v38 = vld [vmem:[#allocation5 + $0x74] sm:$0xff]  }
 0x18c   :  { %666 = vmatpush1.bf16.msra.mxu1 %v589_v25  ;;  %697 = vmatprep.mubr.bf16.mxu1 %v3046_v0 }
 0x18d   :  { %2296 = vmatprep.subr.msk.bf16.mxu1 %vm604_vm2, %v592_v36  ;;  %2526 = vmatprep.subr.bf16.mxu0 %v3047_v13 }
 0x18f   :  { %2527 = vmatpush3.bf16.msra.mxu0 %v1008_v22  ;;  %v1386_v22 = vrot.slane %v1381_v21, %v575_v12  ;;  %v2845_v12 = vld [vmem:[#allocation7 + $0x90] sm:$0xff]  }
 0x190   :  { %668 = vmatpush1.bf16.msra.mxu1 %v606_v37  ;;  %2546 = vmatprep.subr.bf16.mxu0 %v3047_v13  ;;  %v2869_v21 = vld [vmem:[%s3474_s5 + $0x40] sm:$0xff]  }
 0x191   :  { %790 = vmatprep.subr.bf16.mxu1 %v3046_v0 }
 0x193   :  { %2297 = vmatmul.mubr.msk.bf16.vlgmr.msra.gmra.mrb[4].mxu1 %vm600_vm3, %v2801_v39 }
 0x194   :  { %791 = vmatpush1.bf16.msra.mxu1 %v2802_v40 }
 0x195   :  { %792 = vmatprep.subr.bf16.mxu1 %v3046_v0 }
 0x198   :  { %793 = vmatpush1.bf16.msra.mxu1 %v2803_v41  ;;  %v2832_v41 = vld [vmem:[#allocation5 + $0x48] sm:$0xff]  }
 0x199   :  { %794 = vmatprep.subr.bf16.mxu1 %v3046_v0 }
 0x19c   :  { %795 = vmatpush1.bf16.msra.mxu1 %v2804_v42 }
 0x19d   :  { %796 = vmatprep.subr.bf16.mxu1 %v3046_v0 }
 0x1a0   :  { %797 = vmatpush1.bf16.msra.mxu1 %v2805_v43  ;;  %v2833_v43 = vld [vmem:[#allocation5 + $0x7c] sm:$0xff]  }
 0x1a1   :  { %798 = vmatprep.subr.bf16.mxu1 %v3046_v0 }
 0x1a4   :  { %799 = vmatpush1.bf16.msra.mxu1 %v2806_v44  ;;  %v2834_v44 = vld [vmem:[#allocation5 + $0x50] sm:$0xff]  }
 0x1a5   :  { %800 = vmatprep.subr.bf16.mxu1 %v3046_v0 }
 0x1a8   :  { %801 = vmatpush1.bf16.msra.mxu1 %v2807_v45  ;;  %v2835_v45 = vld [vmem:[#allocation5 + $0x84] sm:$0xff]  }
 0x1a9   :  { %802 = vmatprep.subr.bf16.mxu1 %v3046_v0 }
 0x1ac   :  { %803 = vmatpush1.bf16.msra.mxu1 %v2808_v46  ;;  %v2837_v46 = vld [vmem:[#allocation5 + $0x8c] ss:$0 sps:$4 sm:$0xff]  }
 0x1ad   :  { %804 = vmatprep.subr.bf16.mxu1 %v3046_v0 }
 0x1b0   :  { %805 = vmatpush1.bf16.msra.mxu1 %v2809_v47  ;;  %v2836_v47 = vld [vmem:[#allocation5 + $0x58] sm:$0xff]  }
 0x1b1   :  { %806 = vmatprep.subr.bf16.mxu1 %v3046_v0 }
 0x1b4   :  { %807 = vmatpush1.bf16.msra.mxu1 %v2810_v48  ;;  %v1252_v48 = vsel %vm604_vm2, %v2837_v46, 0  ;;  %v2860_v46 = vld [vmem:[#allocation7 + $0x110] sm:$0xff]  }
 0x1b5   :  { %904 = vmatprep.subr.bf16.mxu1 %v3046_v0 }
 0x25e   :  { %v645_v49 = vpop.f32.mrb[0].mxu1 }
 0x25f   :  { %v647_v50 = vpop.f32.mrb[1].mxu1 }
 0x260   :  { %v649_v51 = vpop.f32.mrb[2].mxu1 }
 0x261   :  { %v651_v52 = vpop.f32.mrb[3].mxu1 }
 0x266   :  { %v699_v53 = vpop.f32.mrb[4].mxu1 }
 0x267   :  { %v708_v54 = vmax.f32 %v645_v49, %v699_v53  ;;  %v701_v55 = vpop.f32.mrb[5].mxu1 }
 0x268   :  { %v709_v56 = vmax.f32 %v647_v50, %v701_v55  ;;  %v703_v57 = vpop.f32.mrb[6].mxu1  ;;  %v2840_v55 = vld [vmem:[#allocation5 + $0x90] sm:$0xff]  }
 0x269   :  { %v710_v58 = vmax.f32 %v649_v51, %v703_v57  ;;  %v705_v59 = vpop.f32.mrb[7].mxu1  ;;  %v2838_v51 = vld [vmem:[#allocation5 + $0x60] sm:$0xff]   ;;  %v2841_v57 = vld [vmem:[#allocation5 + $0x98] sm:$0xff]  }
 0x26a   :  { %v711_v60 = vmax.f32 %v651_v52, %v705_v59  ;;  %v2839_v52 = vld [vmem:[#allocation5 + $0x68] ss:$0 sps:$4 sm:$0xff]  }
 0x26b   :  { %v712_v61 = vpack.c.bf16 %v710_v58, %v708_v54  ;;  %v1165_v54 = vsel %vm604_vm2, %v2839_v52, 0  ;;  %v2842_v58 = vld [vmem:[#allocation5 + $0xa0] sm:$0xff]   ;;  %v2843_v59 = vld [vmem:[#allocation5 + $0xa8] sm:$0xff]  }
 0x26c   :  { %v713_v62 = vpack.c.bf16 %v711_v60, %v709_v56  ;;  %v2844_v60 = vld [vmem:[#allocation5 + $0xb0] ss:$0 sps:$4 sm:$0xff]  }
 0x26e   :  { %2307 = vmatprep.mubr.msk.bf16.mxu1 %vm786_vm4, %v713_v62 }
 0x26f   :  { %823 = vmatmul.mubr.bf16.vlgmr.msra.gmra.mrb[8].mxu1 %v712_v61 }
 0x270   :  { %905 = vmatpush1.bf16.msra.mxu1 %v2811_v63  ;;  %2317 = vmatprep.mubr.msk.bf16.mxu1 %vm786_vm4, %v713_v62 }
 0x271   :  { %906 = vmatprep.subr.bf16.mxu1 %v3046_v0 }
 0x274   :  { %907 = vmatpush1.bf16.msra.mxu1 %v2812_v1 }
 0x275   :  { %908 = vmatprep.subr.bf16.mxu1 %v3046_v0 }
 0x278   :  { %909 = vmatpush1.bf16.msra.mxu1 %v2813_v2 }
 0x279   :  { %910 = vmatprep.subr.bf16.mxu1 %v3046_v0 }
 0x27c   :  { %911 = vmatpush1.bf16.msra.mxu1 %v2814_v3 }
 0x27d   :  { %912 = vmatprep.subr.bf16.mxu1 %v3046_v0 }
 0x280   :  { %913 = vmatpush1.bf16.msra.mxu1 %v2815_v4 }
 0x281   :  { %914 = vmatprep.subr.bf16.mxu1 %v3046_v0 }
 0x284   :  { %915 = vmatpush1.bf16.msra.mxu1 %v2816_v6 }
 0x285   :  { %916 = vmatprep.subr.bf16.mxu1 %v3046_v0 }
 0x288   :  { %917 = vmatpush1.bf16.msra.mxu1 %v2817_v7 }
 0x289   :  { %918 = vmatprep.subr.bf16.mxu1 %v3046_v0 }
 0x28c   :  { %919 = vmatpush1.bf16.msra.mxu1 %v2818_v8 }
 0x28d   :  { %920 = vmatprep.subr.bf16.mxu1 %v3046_v0  ;;  %v2825_v0 = vld [vmem:[#allocation5 + $0x18] sm:$0xff]  }
 0x290   :  { %921 = vmatpush1.bf16.msra.mxu1 %v2819_v9 }
 0x291   :  { %2532 = vmatprep.subr.bf16.mxu1 %v3047_v13 }
 0x293   :  { %937 = vmatmul.mubr.bf16.vlgmr.msra.gmra.mrb[12].mxu1 %v712_v61  ;;  %v1337_v61 = vsel %vm604_vm2, %v2844_v60, 0  ;;  %v2864_v60 = vld [vmem:[%s3474_s5 + $0x18] sm:$0xff]  }
 0x294   :  { %2533 = vmatpush3.bf16.msra.mxu1 %v2820_v10  ;;  %2542 = vmatprep.mubr.msk.bf16.mxu1 %vm3048_vm5, %v3047_v13 }
 0x295   :  { %2534 = vmatprep.subr.bf16.mxu1 %v3047_v13 }
 0x298   :  { %2535 = vmatpush3.bf16.msra.mxu1 %v2821_v14 }
 0x299   :  { %2536 = vmatprep.subr.bf16.mxu1 %v3047_v13 }
 0x29c   :  { %2537 = vmatpush3.bf16.msra.mxu1 %v2823_v16 }
 0x29d   :  { %2538 = vmatprep.subr.bf16.mxu1 %v3047_v13 }
 0x2a0   :  { %2539 = vmatpush3.bf16.msra.mxu1 %v2825_v0 }
 0x2a1   :  { %2540 = vmatprep.subr.bf16.mxu1 %v3047_v13 }
 0x2a4   :  { %2541 = vmatpush3.bf16.msra.mxu1 %v1080_v19 }
 0x2a5   :  { %2560 = vmatprep.subr.bf16.mxu1 %v3047_v13 }
 0x342   :  { %v824_v23 = vpop.f32.mrb[8].mxu1 }
 0x343   :  { %v826_v24 = vpop.f32.mrb[9].mxu1 }
 0x344   :  { %v827_v25 = vpop.f32.mrb[10].mxu1 }
 0x345   :  { %v829_v26 = vpop.f32.mrb[11].mxu1 }
 0x366   :  { %v938_v27 = vpop.f32.mrb[12].mxu1 }
 0x367   :  { %v945_v28 = vmax.f32 %v824_v23, %v938_v27  ;;  %v940_v29 = vpop.f32.mrb[13].mxu1 }
 0x368   :  { %v941_v30 = vpop.f32.mrb[14].mxu1 }
 0x369   :  { %v946_v31 = vmax.f32 %v827_v25, %v941_v30  ;;  %v943_v32 = vpop.f32.mrb[15].mxu1  ;;  %v947_v33 = vmax.f32 %v945_v28, 0.0 }
 0x36a   :  { %v2846_v32 = vld [vmem:[#allocation7 + $0xd8] sm:$0xff]  }
 0x36b   :  { %v948_v34 = vmax.f32 %v946_v31, 0.0  ;;  %v2348_v31 = vld [vmem:[%s3473_s4 + $0x10] sm:$0xf] }
 0x36d   :  { %v3292_v36 = vpack.c.bf16 %v948_v34, %v947_v33  ;;  %v2847_v33 = vld [vmem:[#allocation7 + $0x98] sm:$0xff]   ;;  %v2848_v34 = vld [vmem:[#allocation7 + $0xe0] sm:$0xff]  }
 0x36f   :  { %v972_v37 = vshll.u32 %v3292_v36, 16  ;;  %2543 = vmatmul.mubr.msk.bf16.vlgmr.msra.gmra.mrb[16].mxu1 %vm1003_vm6, %v3292_v36  ;;  %v970_v39 = vshrl.u32 %v3292_v36, 16  ;;  %v1133_v56 = vrot.slane %v3292_v36, 1  ;;  %v1305_v62 = vrot.slane %v3292_v36, 2  ;;  %v2850_v36 = vld [vmem:[#allocation7 + $0xe8] sm:$0xff]  }
 0x370   :  { %2561 = vmatpush3.bf16.msra.mxu1 %v2829_v35  ;;  %2570 = vmatprep.mubr.msk.bf16.mxu1 %vm3048_vm5, %v3047_v13  ;;  %v2849_v35 = vld [vmem:[#allocation7 + $0xa0] sm:$0xff]  }
 0x371   :  { %v974_v40 = vrot.slane %v972_v37, 1  ;;  %2562 = vmatprep.subr.bf16.mxu1 %v3047_v13  ;;  %v1218_v49 = vrot.slane %v970_v39, 1  ;;  %v1219_v50 = vrot.slane %v972_v37, 2  ;;  %v2851_v37 = vld [vmem:[#allocation7 + $0xa8] sm:$0xff]  }
 0x373   :  { %v975_v42 = vor.u32 %v974_v40, %v970_v39  ;;  %v1220_v53 = vor.u32 %v1219_v50, %v1218_v49  ;;  %v2853_v39 = vld [vmem:[#allocation7 + $0xb0] sm:$0xff]   ;;  %v2854_v40 = vld [vmem:[#allocation7 + $0xf8] sm:$0xff]  }
 0x374   :  { %2563 = vmatpush3.bf16.msra.mxu1 %v2831_v38  ;;  %v2852_v38 = vld [vmem:[#allocation7 + $0xf0] sm:$0xff]  }
 0x375   :  { %2529 = vmatmul.mubr.msk.bf16.vlgmr.msra.gmra.mrb[24].mxu0 %vm1003_vm6, %v975_v42  ;;  %2564 = vmatprep.subr.bf16.mxu1 %v3047_v13  ;;  %v2856_v42 = vld [vmem:[#allocation7 + $0x100] sm:$0xff]  }
 0x376   :  { %2547 = vmatpush3.bf16.msra.mxu0 %v2832_v41  ;;  %2556 = vmatprep.mubr.msk.bf16.mxu0 %vm3048_vm5, %v3047_v13  ;;  %v2855_v41 = vld [vmem:[#allocation7 + $0xb8] sm:$0xff]  }
 0x377   :  { %2548 = vmatprep.subr.bf16.mxu0 %v3047_v13 }
 0x378   :  { %2565 = vmatpush3.bf16.msra.mxu1 %v2833_v43  ;;  %v2857_v43 = vld [vmem:[#allocation7 + $0xc0] sm:$0xff]  }
 0x379   :  { %2566 = vmatprep.subr.bf16.mxu1 %v3047_v13 }
 0x37a   :  { %2549 = vmatpush3.bf16.msra.mxu0 %v2834_v44  ;;  %v2858_v44 = vld [vmem:[#allocation7 + $0x108] sm:$0xff]  }
 0x37b   :  { %2550 = vmatprep.subr.bf16.mxu0 %v3047_v13 }
 0x37c   :  { %2567 = vmatpush3.bf16.msra.mxu1 %v2835_v45  ;;  %v2859_v45 = vld [vmem:[#allocation7 + $0xc8] sm:$0xff]  }
 0x37d   :  { %2568 = vmatprep.subr.bf16.mxu1 %v3047_v13 }
 0x37e   :  { %2551 = vmatpush3.bf16.msra.mxu0 %v2836_v47 }
 0x37f   :  { %2552 = vmatprep.subr.bf16.mxu0 %v3047_v13 }
 0x380   :  { %2569 = vmatpush3.bf16.msra.mxu1 %v1252_v48 }
 0x381   :  { %2588 = vmatprep.subr.bf16.mxu1 %v3047_v13 }
 0x382   :  { %2553 = vmatpush3.bf16.msra.mxu0 %v2838_v51 }
 0x383   :  { %2571 = vmatmul.mubr.msk.bf16.vlgmr.msra.gmra.mrb[20].mxu1 %vm1003_vm6, %v1220_v53  ;;  %2554 = vmatprep.subr.bf16.mxu0 %v3047_v13 }
 0x384   :  { %2590 = vmatprep.mubr.msk.bf16.mxu1 %vm3048_vm5, %v3047_v13 }
 0x386   :  { %2555 = vmatpush3.bf16.msra.mxu0 %v1165_v54  ;;  %v2861_v54 = vld [vmem:[%s3474_s5] sm:$0xff]  }
 0x387   :  { %2574 = vmatprep.subr.bf16.mxu0 %v3047_v13 }
 0x389   :  { %2557 = vmatmul.mubr.msk.bf16.vlgmr.msra.gmra.mrb[28].mxu0 %vm1003_vm6, %v1133_v56 }
 0x38a   :  { %2575 = vmatpush3.bf16.msra.mxu0 %v2840_v55  ;;  %2584 = vmatprep.mubr.msk.bf16.mxu0 %vm3048_vm5, %v3047_v13 }
 0x38b   :  { %2576 = vmatprep.subr.bf16.mxu0 %v3047_v13 }
 0x38e   :  { %2577 = vmatpush3.bf16.msra.mxu0 %v2841_v57 }
 0x38f   :  { %2578 = vmatprep.subr.bf16.mxu0 %v3047_v13 }
 0x392   :  { %2579 = vmatpush3.bf16.msra.mxu0 %v2842_v58  ;;  %v2862_v58 = vld [vmem:[%s3474_s5 + $0x8] sm:$0xff]  }
 0x393   :  { %2580 = vmatprep.subr.bf16.mxu0 %v3047_v13 }
 0x396   :  { %2581 = vmatpush3.bf16.msra.mxu0 %v2843_v59  ;;  %v2863_v59 = vld [vmem:[%s3474_s5 + $0x10] sm:$0xff]  }
 0x397   :  { %2582 = vmatprep.subr.bf16.mxu0 %v3047_v13 }
 0x39a   :  { %2583 = vmatpush3.bf16.msra.mxu0 %v1337_v61  ;;  %v2877_v61 = vld [vmem:[#allocation8] sm:$0xff]  }
 0x39b   :  { %2594 = vmatprep.subr.bf16.mxu0 %v3047_v13 }
 0x39d   :  { %2585 = vmatmul.mubr.msk.bf16.vlgmr.msra.gmra.mrb[32].mxu0 %vm1003_vm6, %v1305_v62  ;;  %v2878_v62 = vld [vmem:[#allocation8 + $0x8] sm:$0xff]  }
 0x39e   :  { %2596 = vmatprep.mubr.msk.bf16.mxu0 %vm3048_vm5, %v3047_v13 }
 0x442   :  { %v1116_v63 = vpop.f32.mrb[16].mxu1 }
 0x443   :  { %v2544_v1 = vpop.f32.mrb[17].mxu1 }
 0x444   :  { %v1119_v2 = vpop.f32.mrb[18].mxu1  ;;  %v2880_v1 = vld [vmem:[#allocation8 + $0x18] sm:$0xff]  }
 0x445   :  { %v2545_v3 = vpop.f32.mrb[19].mxu1  ;;  %v2881_v2 = vld [vmem:[#allocation8 + $0x20] sm:$0xff]  }
 0x446   :  { %v2882_v3 = vld [vmem:[#allocation8 + $0x28] sm:$0xff]  }
 0x448   :  { %v1044_v4 = vpop.f32.mrb[24].mxu0 }
 0x449   :  { %v1117_v6 = vadd.f32 %v1116_v63, %v1044_v4  ;;  %v2530_v7 = vpop.f32.mrb[25].mxu0  ;;  %v2879_v63 = vld [vmem:[#allocation8 + $0x10] sm:$0xff]  }
 0x44a   :  { %v1047_v8 = vpop.f32.mrb[26].mxu0 }
 0x44b   :  { %v2531_v9 = vpop.f32.mrb[27].mxu0 }
 0x456   :  { %v1288_v10 = vpop.f32.mrb[20].mxu1 }
 0x457   :  { %v2572_v11 = vpop.f32.mrb[21].mxu1 }
 0x458   :  { %v1291_v14 = vpop.f32.mrb[22].mxu1 }
 0x459   :  { %v2573_v15 = vpop.f32.mrb[23].mxu1 }
 0x45c   :  { %v1201_v16 = vpop.f32.mrb[28].mxu0 }
 0x45d   :  { %v1207_v0 = vadd.f32 %v1201_v16, %v1117_v6  ;;  %v2558_v17 = vpop.f32.mrb[29].mxu0 }
 0x45e   :  { %v1204_v18 = vpop.f32.mrb[30].mxu0 }
 0x45f   :  { %v2559_v19 = vpop.f32.mrb[31].mxu0  ;;  %v1294_v20 = vadd.f32 %v1288_v10, %v1207_v0  ;;  %v2865_v0 = vld [vmem:[%s3474_s5 + $0x20] sm:$0xff]   ;;  %v2866_v18 = vld [vmem:[%s3474_s5 + $0x28] sm:$0xff]  }
 0x460   :  { %v2867_v19 = vld [vmem:[%s3474_s5 + $0x30] sm:$0xff]  }
 0x470   :  { %v1373_v23 = vpop.f32.mrb[32].mxu0 }
 0x471   :  { %v1379_v24 = vadd.f32 %v1373_v23, %v1294_v20  ;;  %v2586_v25 = vpop.f32.mrb[33].mxu0  ;;  %v2868_v20 = vld [vmem:[%s3474_s5 + $0x38] sm:$0xff]   ;;  %v2870_v23 = vld [vmem:[%s3474_s5 + $0x48] sm:$0xff]  }
 0x472   :  { %v1376_v26 = vpop.f32.mrb[34].mxu0  ;;  %v2872_v25 = vld [vmem:[%s3474_s5 + $0x58] sm:$0xff]  }
 0x473   :  { %v1388_v27 = vadd.f32 %v1386_v22, %v1379_v24  ;;  %v2587_v28 = vpop.f32.mrb[35].mxu0  ;;  %v2871_v24 = vld [vmem:[%s3474_s5 + $0x50] sm:$0xff]   ;;  %v2873_v26 = vld [vmem:[%s3474_s5 + $0x60] sm:$0xff]  }
 0x474   :  { %v2874_v28 = vld [vmem:[%s3474_s5 + $0x68] sm:$0xff]  }
 0x475   :  { %v1389_v29 = vpack.c.bf16 %v1388_v27, %v1388_v27 }
 0x477   :  { %v1399_v30 = vsel %vm604_vm2, %v1389_v29, 0  ;;  %v2875_v29 = vld [vmem:[%s3474_s5 + $0x70] sm:$0xff]  }
 0x478   :  { %2589 = vmatpush3.bf16.msra.mxu1 %v1399_v30  ;;  %2595 = vmatpush3.bf16.msra.mxu0 %v1399_v30  ;;  %v2876_v30 = vld [vmem:[%s3474_s5 + $0x78] sm:$0xff]   ;;  %s3049_s5 = smov [#allocation11]  }
 0x479   :  { %2600 = vmatprep.subr.bf16.mxu1 %v3047_v13  ;;  %2620 = vmatprep.subr.bf16.mxu0 %v3047_v13  ;;  %s2244_s10 = sshll.u32 %s3049_s5, 4  ;;  %s2245_s10 = int_to_ptr.vmem [resolvable:$true] %s2244_s10 }
 0x47a   :  { %s3007_s11 = scalar_lea.vmem %s2245_s10, 16  ;;  %s3011_s1 = scalar_lea.vmem %s2245_s10, 32 }
 0x47b   :  { %2591 = vmatmul.mubr.msk.bf16.vlgmr.msra.gmra.mrb[24].mxu1 %vm1394_vm7, %v2348_v31  ;;  %2597 = vmatmul.mubr.msk.bf16.vlgmr.msra.gmra.mrb[36].mxu0 %vm1394_vm7, %v2349_v5  ;;  %v2883_v5 = vld [vmem:[#allocation8 + $0x30] sm:$0xff]   ;;  %p3008_p12 = scmp.ne.s32.totalorder %s2245_s10, %s3007_s11  ;;  %p3012_p13 = scmp.lt.s32.totalorder %s2245_s10, %s2245_s10 }
 0x47c   :  { %2601 = vmatpush3.bf16.msra.mxu1 %v2845_v12  ;;  %2621 = vmatpush3.bf16.msra.mxu0 %v2846_v32  ;;  %v2884_v12 = vld [vmem:[#allocation8 + $0x38] sm:$0xff]   ;;  %v1700_v32 = vld [vmem:[#allocation10 + $0x2] ss:$8 sm:$0x3]  ;;  %p3013_p0 = scmp.lt.s32.totalorder %s3011_s1, %s3007_s11 }
 0x47d   :  { %2602 = vmatprep.subr.bf16.mxu1 %v3047_v13  ;;  %2622 = vmatprep.subr.bf16.mxu0 %v3047_v13 }
 0x47e   :  { %2616 = vmatprep.mubr.msk.bf16.mxu1 %vm3048_vm5, %v3047_v13  ;;  %2636 = vmatprep.mubr.msk.bf16.mxu0 %vm3048_vm5, %v3047_v13  ;;  %p3014_p1 = por %p3013_p0, %p3012_p13 }
 0x480   :  { %2603 = vmatpush3.bf16.msra.mxu1 %v2847_v33  ;;  %2623 = vmatpush3.bf16.msra.mxu0 %v2848_v34  ;;  %p3015_p2 = pnand %p3014_p1, %p3008_p12 }
 0x481   :  { %2604 = vmatprep.subr.bf16.mxu1 %v3047_v13  ;;  %2624 = vmatprep.subr.bf16.mxu0 %v3047_v13 }
 0x484   :  { %2605 = vmatpush3.bf16.msra.mxu1 %v2849_v35  ;;  %2625 = vmatpush3.bf16.msra.mxu0 %v2850_v36 }
 0x485   :  { %2606 = vmatprep.subr.bf16.mxu1 %v3047_v13  ;;  %2626 = vmatprep.subr.bf16.mxu0 %v3047_v13 }
 0x488   :  { %2607 = vmatpush3.bf16.msra.mxu1 %v2851_v37  ;;  %2627 = vmatpush3.bf16.msra.mxu0 %v2852_v38 }
 0x489   :  { %2608 = vmatprep.subr.bf16.mxu1 %v3047_v13  ;;  %2628 = vmatprep.subr.bf16.mxu0 %v3047_v13 }
 0x48c   :  { %2609 = vmatpush3.bf16.msra.mxu1 %v2853_v39  ;;  %2629 = vmatpush3.bf16.msra.mxu0 %v2854_v40  ;;  %v2885_v39 = vld [vmem:[#allocation8 + $0x40] sm:$0xff]  }
 0x48d   :  { %2610 = vmatprep.subr.bf16.mxu1 %v3047_v13  ;;  %2630 = vmatprep.subr.bf16.mxu0 %v3047_v13 }
 0x490   :  { %2611 = vmatpush3.bf16.msra.mxu1 %v2855_v41  ;;  %2631 = vmatpush3.bf16.msra.mxu0 %v2856_v42  ;;  %v2886_v41 = vld [vmem:[#allocation8 + $0x48] sm:$0xff]   ;;  %v2887_v42 = vld [vmem:[#allocation8 + $0x50] sm:$0xff]  }
 0x491   :  { %2612 = vmatprep.subr.bf16.mxu1 %v3047_v13  ;;  %2632 = vmatprep.subr.bf16.mxu0 %v3047_v13 }
 0x494   :  { %2613 = vmatpush3.bf16.msra.mxu1 %v2857_v43  ;;  %2633 = vmatpush3.bf16.msra.mxu0 %v2858_v44  ;;  %v2888_v43 = vld [vmem:[#allocation8 + $0x58] sm:$0xff]   ;;  %v2889_v44 = vld [vmem:[#allocation8 + $0x60] sm:$0xff]  }
 0x495   :  { %2614 = vmatprep.subr.bf16.mxu1 %v3047_v13  ;;  %2634 = vmatprep.subr.bf16.mxu0 %v3047_v13 }
 0x498   :  { %2615 = vmatpush3.bf16.msra.mxu1 %v2859_v45  ;;  %2635 = vmatpush3.bf16.msra.mxu0 %v2860_v46  ;;  %v2890_v45 = vld [vmem:[#allocation8 + $0x68] sm:$0xff]   ;;  %v2891_v46 = vld [vmem:[#allocation8 + $0x70] sm:$0xff]  }
 0x499   :  { %2640 = vmatprep.subr.bf16.mxu1 %v3047_v13  ;;  %2688 = vmatprep.subr.bf16.mxu0 %v3047_v13 }
 0x54e   :  { %v1435_v47 = vpop.f32.mrb[24].mxu1  ;;  %v1478_v48 = vpop.f32.mrb[36].mxu0 }
 0x54f   :  { %v1484_v49 = vmax.f32 %v1435_v47, %v1478_v48  ;;  %v2592_v50 = vpop.f32.mrb[25].mxu1  ;;  %v2598_v51 = vpop.f32.mrb[37].mxu0  ;;  %v2892_v47 = vld [vmem:[#allocation8 + $0x78] sm:$0xff]   ;;  %v2033_v48 = vld [vmem:[#allocation10 + $0x3] ss:$8 sm:$0x3] }
 0x550   :  { %v1438_v52 = vpop.f32.mrb[26].mxu1  ;;  %v1481_v53 = vpop.f32.mrb[38].mxu0 }
 0x551   :  { %v1485_v55 = vpack.c.bf16 %v1484_v49, %v1484_v49  ;;  %v2593_v56 = vpop.f32.mrb[27].mxu1  ;;  %v2599_v57 = vpop.f32.mrb[39].mxu0 }
 0x552   :  { %v2142_v56 = vld [vmem:[#allocation10 + $0x4] ss:$8 sm:$0x3] }
 0x553   :  { %2617 = vmatmul.mubr.bf16.vlgmr.msra.gmra.mrb[28].mxu1 %v1485_v55  ;;  %2637 = vmatmul.mubr.bf16.vlgmr.msra.gmra.mrb[40].mxu0 %v1485_v55 }
 0x554   :  { %2641 = vmatpush3.bf16.msra.mxu1 %v2861_v54  ;;  %2648 = vmatprep.mubr.msk.bf16.mxu1 %vm3048_vm5, %v3047_v13 }
 0x555   :  { %2642 = vmatprep.subr.bf16.mxu1 %v3047_v13  ;;  %2704 = vmatprep.mubr.msk.bf16.mxu0 %vm3048_vm5, %v3047_v13 }
 0x556   :  { %2689 = vmatpush3.bf16.msra.mxu0 %v2877_v61 }
 0x557   :  { %2690 = vmatprep.subr.bf16.mxu0 %v3047_v13 }
 0x558   :  { %2643 = vmatpush3.bf16.msra.mxu1 %v2862_v58 }
 0x559   :  { %2644 = vmatprep.subr.bf16.mxu1 %v3047_v13 }
 0x55a   :  { %2691 = vmatpush3.bf16.msra.mxu0 %v2878_v62 }
 0x55b   :  { %2692 = vmatprep.subr.bf16.mxu0 %v3047_v13 }
 0x55c   :  { %2645 = vmatpush3.bf16.msra.mxu1 %v2863_v59 }
 0x55d   :  { %2646 = vmatprep.subr.bf16.mxu1 %v3047_v13 }
 0x55e   :  { %2693 = vmatpush3.bf16.msra.mxu0 %v2879_v63 }
 0x55f   :  { %2694 = vmatprep.subr.bf16.mxu0 %v3047_v13 }
 0x560   :  { %2647 = vmatpush3.bf16.msra.mxu1 %v2864_v60 }
 0x561   :  { %2652 = vmatprep.subr.bf16.mxu1 %v3047_v13 }
 0x562   :  { %2695 = vmatpush3.bf16.msra.mxu0 %v2880_v1 }
 0x563   :  { %2696 = vmatprep.subr.bf16.mxu0 %v3047_v13 }
 0x566   :  { %2697 = vmatpush3.bf16.msra.mxu0 %v2881_v2 }
 0x567   :  { %2698 = vmatprep.subr.bf16.mxu0 %v3047_v13 }
 0x56a   :  { %2699 = vmatpush3.bf16.msra.mxu0 %v2882_v3 }
 0x56b   :  { %2700 = vmatprep.subr.bf16.mxu0 %v3047_v13 }
 0x56e   :  { %2701 = vmatpush3.bf16.msra.mxu0 %v2883_v5 }
 0x56f   :  { %2702 = vmatprep.subr.bf16.mxu0 %v3047_v13 }
 0x572   :  { %2703 = vmatpush3.bf16.msra.mxu0 %v2884_v12 }
 0x573   :  { %2708 = vmatprep.subr.bf16.mxu0 %v3047_v13 }
 0x626   :  { %v1602_v4 = vpop.f32.mrb[28].mxu1  ;;  %v1690_v6 = vpop.f32.mrb[40].mxu0 }
 0x627   :  { %v1696_v7 = vmax.f32 %v1602_v4, %v1690_v6  ;;  %v2618_v8 = vpop.f32.mrb[29].mxu1  ;;  %v2638_v9 = vpop.f32.mrb[41].mxu0 }
 0x628   :  { %v1605_v10 = vpop.f32.mrb[30].mxu1  ;;  %v1693_v11 = vpop.f32.mrb[42].mxu0 }
 0x629   :  { %v1697_v14 = vmax.f32 %v1696_v7, 0.0  ;;  %v2619_v15 = vpop.f32.mrb[31].mxu1  ;;  %v2639_v16 = vpop.f32.mrb[43].mxu0 }
 0x62b   :  { %v1698_v17 = vpack.c.bf16 %v1697_v14, %v1697_v14 }
 0x62d   :  { %2649 = vmatmul.mubr.msk.bf16.vlgmr.msra.gmra.mrb[32].mxu1 %vm1733_vm8, %v1698_v17  ;;  %v1787_v22 = vshrl.u32 %v1698_v17, 16  ;;  %v1867_v27 = vrot.slane %v1698_v17, 1 }
 0x62e   :  { %2653 = vmatpush3.bf16.msra.mxu1 %v2865_v0  ;;  %2660 = vmatprep.mubr.msk.bf16.mxu1 %vm3048_vm5, %v3047_v13 }
 0x62f   :  { %2654 = vmatprep.subr.bf16.mxu1 %v3047_v13  ;;  %v1945_v31 = vrot.slane %v1787_v22, 1 }
 0x632   :  { %2655 = vmatpush3.bf16.msra.mxu1 %v2866_v18 }
 0x633   :  { %2656 = vmatprep.subr.bf16.mxu1 %v3047_v13 }
 0x636   :  { %2657 = vmatpush3.bf16.msra.mxu1 %v2867_v19 }
 0x637   :  { %2658 = vmatprep.subr.bf16.mxu1 %v3047_v13 }
 0x63a   :  { %2659 = vmatpush3.bf16.msra.mxu1 %v2868_v20 }
 0x63b   :  { %2664 = vmatprep.subr.bf16.mxu1 %v3047_v13 }
 0x63d   :  { %2661 = vmatmul.mubr.msk.bf16.vlgmr.msra.gmra.mrb[32].mxu1 %vm1733_vm8, %v1787_v22 }
 0x63e   :  { %2665 = vmatpush3.bf16.msra.mxu1 %v2869_v21  ;;  %2672 = vmatprep.mubr.msk.bf16.mxu1 %vm3048_vm5, %v3047_v13 }
 0x63f   :  { %2666 = vmatprep.subr.bf16.mxu1 %v3047_v13 }
 0x642   :  { %2667 = vmatpush3.bf16.msra.mxu1 %v2870_v23 }
 0x643   :  { %2668 = vmatprep.subr.bf16.mxu1 %v3047_v13 }
 0x646   :  { %2669 = vmatpush3.bf16.msra.mxu1 %v2871_v24 }
 0x647   :  { %2670 = vmatprep.subr.bf16.mxu1 %v3047_v13 }
 0x64a   :  { %2671 = vmatpush3.bf16.msra.mxu1 %v2872_v25 }
 0x64b   :  { %2676 = vmatprep.subr.bf16.mxu1 %v3047_v13 }
 0x64d   :  { %2673 = vmatmul.mubr.msk.bf16.vlgmr.msra.gmra.mrb[32].mxu1 %vm1733_vm8, %v1867_v27 }
 0x64e   :  { %2677 = vmatpush3.bf16.msra.mxu1 %v2873_v26  ;;  %2684 = vmatprep.mubr.msk.bf16.mxu1 %vm3048_vm5, %v3047_v13 }
 0x64f   :  { %2678 = vmatprep.subr.bf16.mxu1 %v3047_v13 }
 0x652   :  { %2679 = vmatpush3.bf16.msra.mxu1 %v2874_v28 }
 0x653   :  { %2680 = vmatprep.subr.bf16.mxu1 %v3047_v13 }
 0x656   :  { %2681 = vmatpush3.bf16.msra.mxu1 %v2875_v29 }
 0x657   :  { %2682 = vmatprep.subr.bf16.mxu1 %v3047_v13 }
 0x65a   :  { %2683 = vmatpush3.bf16.msra.mxu1 %v2876_v30 }
 0x65d   :  { %2685 = vmatmul.mubr.msk.bf16.vlgmr.msra.gmra.mrb[32].mxu1 %vm1733_vm8, %v1945_v31 }
 0x730   :  { %v2007_v33 = vpop.f32.mrb[32].mxu1 }
 0x731   :  { %v2728_v34 = vadd.f32 %v2007_v33, %v1700_v32  ;;  %v2686_v35 = vpop.f32.mrb[33].mxu1 }
 0x732   :  { %v2010_v36 = vpop.f32.mrb[34].mxu1 }
 0x733   :  { %v2014_v37 = vmax.f32 %v2728_v34, 0.0  ;;  %v2687_v38 = vpop.f32.mrb[35].mxu1 }
 0x735   :  { %v2015_v40 = vpack.c.bf16 %v2014_v37, %v2014_v37 }
 0x737   :  { %2705 = vmatmul.mubr.bf16.vlgmr.msra.gmra.mrb[44].mxu0 %v2015_v40 }
 0x738   :  { %2709 = vmatpush3.bf16.msra.mxu0 %v2885_v39  ;;  %2724 = vmatprep.mubr.msk.bf16.mxu0 %vm3048_vm5, %v3047_v13 }
 0x739   :  { %2710 = vmatprep.subr.bf16.mxu0 %v3047_v13 }
 0x73c   :  { %2711 = vmatpush3.bf16.msra.mxu0 %v2886_v41 }
 0x73d   :  { %2712 = vmatprep.subr.bf16.mxu0 %v3047_v13 }
 0x740   :  { %2713 = vmatpush3.bf16.msra.mxu0 %v2887_v42 }
 0x741   :  { %2714 = vmatprep.subr.bf16.mxu0 %v3047_v13 }
 0x744   :  { %2715 = vmatpush3.bf16.msra.mxu0 %v2888_v43 }
 0x745   :  { %2716 = vmatprep.subr.bf16.mxu0 %v3047_v13 }
 0x748   :  { %2717 = vmatpush3.bf16.msra.mxu0 %v2889_v44 }
 0x749   :  { %2718 = vmatprep.subr.bf16.mxu0 %v3047_v13 }
 0x74c   :  { %2719 = vmatpush3.bf16.msra.mxu0 %v2890_v45 }
 0x74d   :  { %2720 = vmatprep.subr.bf16.mxu0 %v3047_v13 }
 0x750   :  { %2721 = vmatpush3.bf16.msra.mxu0 %v2891_v46 }
 0x751   :  { %2722 = vmatprep.subr.bf16.mxu0 %v3047_v13 }
 0x754   :  { %2723 = vmatpush3.bf16.msra.mxu0 %v2892_v47 }
 0x80a   :  { %v2116_v49 = vpop.f32.mrb[44].mxu0 }
 0x80b   :  { %v2117_v50 = vadd.f32 %v2116_v49, %v2033_v48  ;;  %v2706_v51 = vpop.f32.mrb[45].mxu0 }
 0x80c   :  { %v2119_v52 = vpop.f32.mrb[46].mxu0 }
 0x80d   :  { %v2122_v53 = vmax.f32 %v2117_v50, 0.0  ;;  %v2707_v54 = vpop.f32.mrb[47].mxu0 }
 0x80f   :  { %v2123_v55 = vpack.c.bf16 %v2122_v53, %v2122_v53 }
 0x811   :  { %2725 = vmatmul.mubr.bf16.vlgmr.msra.gmra.mrb[48].mxu0 %v2123_v55 }
 0x8e4   :  { %v2225_v57 = vpop.f32.mrb[48].mxu0 }
 0x8e5   :  { %v2226_v58 = vadd.f32 %v2225_v57, %v2142_v56  ;;  %v2726_v59 = vpop.f32.mrb[49].mxu0 }
 0x8e6   :  { %v2228_v60 = vpop.f32.mrb[50].mxu0 }
 0x8e7   :  { %v2231_v61 = vsub.f32 0.0, %v2226_v58  ;;  %v2727_v62 = vpop.f32.mrb[51].mxu0 }
 0x8e9   :  { %v2232_v63 = vmul.f32 1.442695, %v2231_v61 }
 0x8eb   :  { %2893 = vpow2.f32 %v2232_v63 }
 0x8f5   :  { %v2894_v13 = vpop.eup %2893 }
 0x8f6   :  { %v2234_v1 = vadd.f32 1.0, %v2894_v13 }
 0x8f8   :  { %2895 = vrcp.f32 %v2234_v1 }
 0x902   :  { %v2896_v2 = vpop.eup %2895 }
 0x903   :  { %2237 = vst [vmem:[#allocation11] sm:$0x1] %v2896_v2 }
 0x904   :  { %3018 = shalt.err (!%p3015_p2)
}
 0x905   :  { %s3019_s13 = scalar_lea.hbm %s3477_s8, 16 }
 0x906   :  { %p3020_p3 = scmp.ne.s32.totalorder %s3477_s8, %s3019_s13  ;;  %p3023_p4 = scmp.lt.u32.totalorder %s3019_s13, %s3477_s8 }
 0x908   :  { %p3025_p5 = pnand %p3023_p4, %p3020_p3 }
 0x90a   :  { %3028 = shalt.err (!%p3025_p5)
}
 0x90b   :  { %2247 = dma.vmem_to_hbm [thread:$0]  %s2245_s10, 16, %s3477_s8, [#allocation4]  }
 0x90c   :  { %3035 = dma.done.wait [#allocation4], 16  }
 0x90d   :  { %3036 = vsyncadd [#allocation4], 4294967280 }
 0x90e   :  { %2251 = vsyncpa [#allocation3], 1 }
 0x90f   :  { %2252 = vsyncpa [#allocation6], 1 }
 0x910   :  { %2253 = vsyncpa [#allocation9], 1 }
 0x911   :  { %2254 = vsyncpa [#allocation4], 1 }

</bundles_post_ra>
